<compile_context>
chip_gen: v6e
topology: v6e:2x2x1
jax: 0.10.0
libtpu: 0.0.40
codegen_flags: <defaults>
</compile_context>

<pallas_src>
import jax
import jax.numpy as jnp
from jax.experimental import pallas as pl
from jax.experimental.pallas import tpu as pltpu

IN = 64            # LSTM input size
H = 100            # LSTM hidden size per direction
H2 = 2 * H         # bidirectional width (200)
OUT = 10           # fc output
HP = 128           # lane-padded width of one gate slab
GP = 3 * HP        # per-direction gate block (i, g, o only — f gate is dead), 384 lanes
OUTP = 128         # lane-dense padded output width
ROW_ALIGN = 16     # row alignment (bf16 output tile is (16, 128))
_GATES = (0, 2, 3)  # PyTorch gate row order is (i, f, g, o); we keep i, g, o


def rnn_att_kernel(x_ref, w0_ref, w1_ref, fcw_ref, b_ref, o_ref):
    def lstm_cell(g):
        # Single LSTM step with h0 = c0 = 0 (the f*c0 term is exactly zero and the
        # f gate columns were never packed).  Gates live in 128-lane slabs; the
        # zero pad-lanes stay exactly 0: sigmoid(0)*tanh(sigmoid(0)*tanh(0)) == 0.
        i = jax.nn.sigmoid(g[:, 0 * HP:1 * HP])
        gg = jnp.tanh(g[:, 1 * HP:2 * HP])
        o = jax.nn.sigmoid(g[:, 2 * HP:3 * HP])
        return o * jnp.tanh(i * gg)

    x = x_ref[...]                                                   # (bb, 64)

    # ---- LSTM layer 0: fwd+bwd fused into one matmul (K=64, N=768) ----
    g0 = jnp.dot(x, w0_ref[...], preferred_element_type=jnp.float32) + b_ref[0:1, :]
    h0 = jnp.concatenate([lstm_cell(g0[:, :GP]),
                          lstm_cell(g0[:, GP:])], axis=1)            # (bb, 256) aligned

    # ---- LSTM layer 1: fwd+bwd fused (K=256 padded, N=768) ----
    g1 = jnp.dot(h0, w1_ref[...], preferred_element_type=jnp.float32) + b_ref[1:2, :]
    h1 = jnp.concatenate([lstm_cell(g1[:, :GP]),
                          lstm_cell(g1[:, GP:])], axis=1)            # (bb, 256)

    # tanh -> self-attention over length-1 sequence (softmax == 1, identity) -> tanh
    t = jnp.tanh(jnp.tanh(h1))

    # ---- fc: Linear(200, 10), lane-dense 128-wide output; dropout is identity ----
    y = jnp.dot(t, fcw_ref[...], preferred_element_type=jnp.float32) + b_ref[2:3, :OUTP]
    o_ref[...] = jnp.tanh(y).astype(o_ref.dtype)                     # (bb, 128) bf16


def make_params(key):
    """PyTorch-style init (raw weights kept for the reference) + kernel packing."""
    ks = iter(jax.random.split(key, 24))

    def uni(shape, fan_in):
        bound = 1.0 / jnp.sqrt(jnp.float32(fan_in))
        return jax.random.uniform(next(ks), shape, jnp.float32, -bound, bound)

    raw = {}
    for name, in_dim in (("l0f", IN), ("l0b", IN), ("l1f", H2), ("l1b", H2)):
        w_ih = uni((4 * H, in_dim), H)     # PyTorch LSTM init: U(-1/sqrt(H), 1/sqrt(H))
        b_ih = uni((4 * H,), H)
        b_hh = uni((4 * H,), H)
        raw["w_" + name] = w_ih            # W_hh @ h0 == 0, so W_hh is never used
        raw["b_" + name] = b_ih + b_hh
    raw["fc_w"] = uni((OUT, H2), H2)       # Linear init: U(-1/sqrt(200), 1/sqrt(200))
    raw["fc_b"] = uni((OUT,), H2)
    # SelfAttention projection weights never affect the output for a length-1
    # sequence (softmax over dim=1 is identically 1) -> not materialized.

    # ---- pack for the kernel: 128-lane slab per live gate, directions fused ----
    def pack_w_l0(w_ih):                   # (4H, 64) -> (64, 3*HP)
        w = jnp.zeros((IN, GP), jnp.float32)
        for s, k in enumerate(_GATES):
            w = w.at[:, s * HP:s * HP + H].set(w_ih[k * H:(k + 1) * H, :].T)
        return w

    def pack_w_l1(w_ih):                   # (4H, 200) -> (2*HP, 3*HP)
        w = jnp.zeros((2 * HP, GP), jnp.float32)
        for s, k in enumerate(_GATES):
            blk = w_ih[k * H:(k + 1) * H, :]
            w = w.at[0:H, s * HP:s * HP + H].set(blk[:, 0:H].T)
            w = w.at[HP:HP + H, s * HP:s * HP + H].set(blk[:, H:2 * H].T)
        return w

    def pack_b(b):                         # (4H,) -> (3*HP,)
        out = jnp.zeros((GP,), jnp.float32)
        for s, k in enumerate(_GATES):
            out = out.at[s * HP:s * HP + H].set(b[k * H:(k + 1) * H])
        return out

    p = dict(raw)
    p["W0"] = jnp.concatenate([pack_w_l0(raw["w_l0f"]), pack_w_l0(raw["w_l0b"])], axis=1)
    p["W1"] = jnp.concatenate([pack_w_l1(raw["w_l1f"]), pack_w_l1(raw["w_l1b"])], axis=1)
    fcw = jnp.zeros((2 * HP, OUTP), jnp.float32)
    fcw = fcw.at[0:H, 0:OUT].set(raw["fc_w"][:, 0:H].T)
    fcw = fcw.at[HP:HP + H, 0:OUT].set(raw["fc_w"][:, H:2 * H].T)
    p["FCW"] = fcw
    b_all = jnp.zeros((8, 2 * GP), jnp.float32)
    b_all = b_all.at[0, :].set(jnp.concatenate([pack_b(raw["b_l0f"]), pack_b(raw["b_l0b"])]))
    b_all = b_all.at[1, :].set(jnp.concatenate([pack_b(raw["b_l1f"]), pack_b(raw["b_l1b"])]))
    b_all = b_all.at[2, 0:OUT].set(raw["fc_b"])
    p["B"] = b_all
    return p


def _cdiv(a, b):
    return -(-a // b)


def _round_up(a, b):
    return _cdiv(a, b) * b


def rnn_att_forward(x, p, *, block_b=1024):
    """Batched forward: weights stay VMEM-resident, activations stream per block.

    block_b = 1024 keeps the live set well under 32 MiB (safe on v5e/v6e/v7x);
    blocks are balanced to avoid over-padding and the grid is forced to >= 2
    steps (when the batch allows) so the "parallel" axis shards across both
    TensorCores on v7x.
    """
    b_in = x.shape[0]
    rows = _round_up(max(b_in, 1), ROW_ALIGN)
    n_blocks = _cdiv(rows, block_b)
    if rows >= 2 * ROW_ALIGN:
        n_blocks = max(n_blocks, 2)                # keep both v7x TCs busy
    bb = _round_up(_cdiv(rows, n_blocks), ROW_ALIGN)
    n_blocks = _cdiv(rows, bb)
    b_pad = n_blocks * bb
    if b_pad != b_in:
        x = jnp.pad(x, ((0, b_pad - b_in), (0, 0)))

    const = lambda shape: pl.BlockSpec(shape, lambda i: (0, 0))
    out = pl.pallas_call(
        rnn_att_kernel,
        out_shape=jax.ShapeDtypeStruct((b_pad, OUTP), jnp.bfloat16),
        grid_spec=pltpu.PrefetchScalarGridSpec(
            num_scalar_prefetch=0,
            grid=(n_blocks,),
            in_specs=[
                pl.BlockSpec((bb, IN), lambda i: (i, 0)),   # activations stream
                const((IN, 2 * GP)),                        # W0   (64, 768)  resident
                const((2 * HP, 2 * GP)),                    # W1   (256, 768) resident
                const((2 * HP, OUTP)),                      # FCW  (256, 128) resident
                const((8, 2 * GP)),                         # packed biases
            ],
            out_specs=pl.BlockSpec((bb, OUTP), lambda i: (i, 0)),
        ),
        compiler_params=pltpu.CompilerParams(
            dimension_semantics=("parallel",),
            vmem_limit_bytes=32 * 1024 * 1024,              # raise v5e's 16 MiB default
        ),
    )(x, p["W0"], p["W1"], p["FCW"], p["B"])
    return out[:b_in, :OUT].astype(jnp.float32)


def rnn_att_reference(x, p):
    """Pure-JAX reference with identical math (uses the raw, un-packed weights)."""
    def cell(xin, w_ih, b):
        g = xin @ w_ih.T + b
        i = jax.nn.sigmoid(g[:, :H])
        gg = jnp.tanh(g[:, 2 * H:3 * H])
        o = jax.nn.sigmoid(g[:, 3 * H:])
        return o * jnp.tanh(i * gg)

    h0 = jnp.concatenate([cell(x, p["w_l0f"], p["b_l0f"]),
                          cell(x, p["w_l0b"], p["b_l0b"])], axis=1)
    out = jnp.concatenate([cell(h0, p["w_l1f"], p["b_l1f"]),
                           cell(h0, p["w_l1b"], p["b_l1b"])], axis=1)
    out = jnp.tanh(out)
    # attention: softmax over the length-1 sequence axis == 1 -> identity
    out = jnp.tanh(out)
    out = out @ p["fc_w"].T + p["fc_b"]
    return jnp.tanh(out)


if __name__ == "__main__":
    key = jax.random.PRNGKey(0)
    kx1, kx2, kp = jax.random.split(key, 3)
    params = make_params(kp)

    # Small single-block case.
    B = 8
    x = jax.random.normal(kx1, (B, IN), dtype=jnp.float32)
    out = jax.block_until_ready(rnn_att_forward(x, params))
    ref = rnn_att_reference(x, params)
    assert out.shape == (B, OUT)
    assert jnp.allclose(out, ref, atol=1e-2, rtol=1e-2), "mismatch vs reference (B=8)"

    # Multi-block case: exercises streaming, balanced-block padding and the
    # >=2-block megacore split (grid of 2 parallel steps).
    B2 = 40
    x2 = jax.random.normal(kx2, (B2, IN), dtype=jnp.float32)
    out2 = jax.block_until_ready(rnn_att_forward(x2, params))
    ref2 = rnn_att_reference(x2, params)
    assert out2.shape == (B2, OUT)
    assert jnp.allclose(out2, ref2, atol=1e-2, rtol=1e-2), "mismatch vs reference (B=40)"

    print("KERNEL_OK")
</pallas_src>

<mosaic_0001>
module attributes {stable_mosaic.version = 11 : i64} {
  func.func @rnn_att_kernel(%arg0: i32, %arg1: memref<16x64xf32, #tpu.memory_space<vmem>>, %arg2: memref<64x768xf32, #tpu.memory_space<vmem>>, %arg3: memref<256x768xf32, #tpu.memory_space<vmem>>, %arg4: memref<256x128xf32, #tpu.memory_space<vmem>>, %arg5: memref<8x768xf32, #tpu.memory_space<vmem>>, %arg6: memref<16x128xbf16, #tpu.memory_space<vmem>>) attributes {dimension_semantics = [#tpu.dimension_semantics<parallel>], iteration_bounds = array<i64: 1>, scalar_prefetch = 0 : i64, scratch_operands = 0 : i64, tpu.core_type = #tpu.core_type<tc>, window_params = [{transform_indices = @transform_0, window_bounds = array<i64: 16, 64>}, {pipeline_mode = #tpu.pipeline_mode<synchronous>, transform_indices = @transform_1, window_bounds = array<i64: 64, 768>}, {pipeline_mode = #tpu.pipeline_mode<synchronous>, transform_indices = @transform_2, window_bounds = array<i64: 256, 768>}, {pipeline_mode = #tpu.pipeline_mode<synchronous>, transform_indices = @transform_3, window_bounds = array<i64: 256, 128>}, {pipeline_mode = #tpu.pipeline_mode<synchronous>, transform_indices = @transform_4, window_bounds = array<i64: 8, 768>}, {transform_indices = @transform_5, window_bounds = array<i64: 16, 128>}]} {
    %c0 = arith.constant 0 : index
    %c0_0 = arith.constant 0 : index
    %0 = vector.load %arg1[%c0, %c0_0] : memref<16x64xf32, #tpu.memory_space<vmem>>, vector<16x64xf32>
    %c0_1 = arith.constant 0 : index
    %c0_2 = arith.constant 0 : index
    %1 = vector.load %arg2[%c0_1, %c0_2] : memref<64x768xf32, #tpu.memory_space<vmem>>, vector<64x768xf32>
    %cst = arith.constant dense<0.000000e+00> : vector<16x768xf32>
    %2 = tpu.matmul %0, %1, %cst {dimension_numbers = #tpu.dot_dimension_numbers<[1], [0], [0], [1], [0, 0, 1, 1], [], []>} : vector<16x64xf32>, vector<64x768xf32>, vector<16x768xf32> -> vector<16x768xf32>
    %c0_3 = arith.constant 0 : index
    %c0_4 = arith.constant 0 : index
    %3 = vector.load %arg5[%c0_3, %c0_4] : memref<8x768xf32, #tpu.memory_space<vmem>>, vector<1x768xf32>
    %4 = vector.broadcast %3 : vector<1x768xf32> to vector<16x768xf32>
    %5 = arith.addf %2, %4 : vector<16x768xf32>
    %6 = vector.extract_strided_slice %5 {offsets = [0, 0], sizes = [16, 384], strides = [1, 1]} : vector<16x768xf32> to vector<16x384xf32>
    %7 = vector.extract_strided_slice %6 {offsets = [0, 0], sizes = [16, 128], strides = [1, 1]} : vector<16x384xf32> to vector<16x128xf32>
    %8 = arith.negf %7 : vector<16x128xf32>
    %9 = math.exp %8 : vector<16x128xf32>
    %cst_5 = arith.constant 1.000000e+00 : f32
    %10 = vector.broadcast %cst_5 : f32 to vector<16x128xf32>
    %11 = arith.addf %10, %9 : vector<16x128xf32>
    %12 = arith.divf %10, %11 : vector<16x128xf32>
    %13 = vector.extract_strided_slice %6 {offsets = [0, 128], sizes = [16, 128], strides = [1, 1]} : vector<16x384xf32> to vector<16x128xf32>
    %14 = math.tanh %13 : vector<16x128xf32>
    %15 = vector.extract_strided_slice %6 {offsets = [0, 256], sizes = [16, 128], strides = [1, 1]} : vector<16x384xf32> to vector<16x128xf32>
    %16 = arith.negf %15 : vector<16x128xf32>
    %17 = math.exp %16 : vector<16x128xf32>
    %cst_6 = arith.constant 1.000000e+00 : f32
    %18 = vector.broadcast %cst_6 : f32 to vector<16x128xf32>
    %19 = arith.addf %18, %17 : vector<16x128xf32>
    %20 = arith.divf %18, %19 : vector<16x128xf32>
    %21 = arith.mulf %12, %14 : vector<16x128xf32>
    %22 = math.tanh %21 : vector<16x128xf32>
    %23 = arith.mulf %20, %22 : vector<16x128xf32>
    %24 = vector.extract_strided_slice %5 {offsets = [0, 384], sizes = [16, 384], strides = [1, 1]} : vector<16x768xf32> to vector<16x384xf32>
    %25 = vector.extract_strided_slice %24 {offsets = [0, 0], sizes = [16, 128], strides = [1, 1]} : vector<16x384xf32> to vector<16x128xf32>
    %26 = arith.negf %25 : vector<16x128xf32>
    %27 = math.exp %26 : vector<16x128xf32>
    %cst_7 = arith.constant 1.000000e+00 : f32
    %28 = vector.broadcast %cst_7 : f32 to vector<16x128xf32>
    %29 = arith.addf %28, %27 : vector<16x128xf32>
    %30 = arith.divf %28, %29 : vector<16x128xf32>
    %31 = vector.extract_strided_slice %24 {offsets = [0, 128], sizes = [16, 128], strides = [1, 1]} : vector<16x384xf32> to vector<16x128xf32>
    %32 = math.tanh %31 : vector<16x128xf32>
    %33 = vector.extract_strided_slice %24 {offsets = [0, 256], sizes = [16, 128], strides = [1, 1]} : vector<16x384xf32> to vector<16x128xf32>
    %34 = arith.negf %33 : vector<16x128xf32>
    %35 = math.exp %34 : vector<16x128xf32>
    %cst_8 = arith.constant 1.000000e+00 : f32
    %36 = vector.broadcast %cst_8 : f32 to vector<16x128xf32>
    %37 = arith.addf %36, %35 : vector<16x128xf32>
    %38 = arith.divf %36, %37 : vector<16x128xf32>
    %39 = arith.mulf %30, %32 : vector<16x128xf32>
    %40 = math.tanh %39 : vector<16x128xf32>
    %41 = arith.mulf %38, %40 : vector<16x128xf32>
    %42 = tpu.concatenate %23, %41 in 1 : vector<16x128xf32>, vector<16x128xf32> -> vector<16x256xf32>
    %c0_9 = arith.constant 0 : index
    %c0_10 = arith.constant 0 : index
    %43 = vector.load %arg3[%c0_9, %c0_10] : memref<256x768xf32, #tpu.memory_space<vmem>>, vector<256x768xf32>
    %cst_11 = arith.constant dense<0.000000e+00> : vector<16x768xf32>
    %44 = tpu.matmul %42, %43, %cst_11 {dimension_numbers = #tpu.dot_dimension_numbers<[1], [0], [0], [1], [0, 0, 1, 1], [], []>} : vector<16x256xf32>, vector<256x768xf32>, vector<16x768xf32> -> vector<16x768xf32>
    %c1 = arith.constant 1 : index
    %c0_12 = arith.constant 0 : index
    %45 = vector.load %arg5[%c1, %c0_12] : memref<8x768xf32, #tpu.memory_space<vmem>>, vector<1x768xf32>
    %46 = vector.broadcast %45 : vector<1x768xf32> to vector<16x768xf32>
    %47 = arith.addf %44, %46 : vector<16x768xf32>
    %48 = vector.extract_strided_slice %47 {offsets = [0, 0], sizes = [16, 384], strides = [1, 1]} : vector<16x768xf32> to vector<16x384xf32>
    %49 = vector.extract_strided_slice %48 {offsets = [0, 0], sizes = [16, 128], strides = [1, 1]} : vector<16x384xf32> to vector<16x128xf32>
    %50 = arith.negf %49 : vector<16x128xf32>
    %51 = math.exp %50 : vector<16x128xf32>
    %cst_13 = arith.constant 1.000000e+00 : f32
    %52 = vector.broadcast %cst_13 : f32 to vector<16x128xf32>
    %53 = arith.addf %52, %51 : vector<16x128xf32>
    %54 = arith.divf %52, %53 : vector<16x128xf32>
    %55 = vector.extract_strided_slice %48 {offsets = [0, 128], sizes = [16, 128], strides = [1, 1]} : vector<16x384xf32> to vector<16x128xf32>
    %56 = math.tanh %55 : vector<16x128xf32>
    %57 = vector.extract_strided_slice %48 {offsets = [0, 256], sizes = [16, 128], strides = [1, 1]} : vector<16x384xf32> to vector<16x128xf32>
    %58 = arith.negf %57 : vector<16x128xf32>
    %59 = math.exp %58 : vector<16x128xf32>
    %cst_14 = arith.constant 1.000000e+00 : f32
    %60 = vector.broadcast %cst_14 : f32 to vector<16x128xf32>
    %61 = arith.addf %60, %59 : vector<16x128xf32>
    %62 = arith.divf %60, %61 : vector<16x128xf32>
    %63 = arith.mulf %54, %56 : vector<16x128xf32>
    %64 = math.tanh %63 : vector<16x128xf32>
    %65 = arith.mulf %62, %64 : vector<16x128xf32>
    %66 = vector.extract_strided_slice %47 {offsets = [0, 384], sizes = [16, 384], strides = [1, 1]} : vector<16x768xf32> to vector<16x384xf32>
    %67 = vector.extract_strided_slice %66 {offsets = [0, 0], sizes = [16, 128], strides = [1, 1]} : vector<16x384xf32> to vector<16x128xf32>
    %68 = arith.negf %67 : vector<16x128xf32>
    %69 = math.exp %68 : vector<16x128xf32>
    %cst_15 = arith.constant 1.000000e+00 : f32
    %70 = vector.broadcast %cst_15 : f32 to vector<16x128xf32>
    %71 = arith.addf %70, %69 : vector<16x128xf32>
    %72 = arith.divf %70, %71 : vector<16x128xf32>
    %73 = vector.extract_strided_slice %66 {offsets = [0, 128], sizes = [16, 128], strides = [1, 1]} : vector<16x384xf32> to vector<16x128xf32>
    %74 = math.tanh %73 : vector<16x128xf32>
    %75 = vector.extract_strided_slice %66 {offsets = [0, 256], sizes = [16, 128], strides = [1, 1]} : vector<16x384xf32> to vector<16x128xf32>
    %76 = arith.negf %75 : vector<16x128xf32>
    %77 = math.exp %76 : vector<16x128xf32>
    %cst_16 = arith.constant 1.000000e+00 : f32
    %78 = vector.broadcast %cst_16 : f32 to vector<16x128xf32>
    %79 = arith.addf %78, %77 : vector<16x128xf32>
    %80 = arith.divf %78, %79 : vector<16x128xf32>
    %81 = arith.mulf %72, %74 : vector<16x128xf32>
    %82 = math.tanh %81 : vector<16x128xf32>
    %83 = arith.mulf %80, %82 : vector<16x128xf32>
    %84 = tpu.concatenate %65, %83 in 1 : vector<16x128xf32>, vector<16x128xf32> -> vector<16x256xf32>
    %85 = math.tanh %84 : vector<16x256xf32>
    %86 = math.tanh %85 : vector<16x256xf32>
    %c0_17 = arith.constant 0 : index
    %c0_18 = arith.constant 0 : index
    %87 = vector.load %arg4[%c0_17, %c0_18] : memref<256x128xf32, #tpu.memory_space<vmem>>, vector<256x128xf32>
    %cst_19 = arith.constant dense<0.000000e+00> : vector<16x128xf32>
    %88 = tpu.matmul %86, %87, %cst_19 {dimension_numbers = #tpu.dot_dimension_numbers<[1], [0], [0], [1], [0, 0, 1, 1], [], []>} : vector<16x256xf32>, vector<256x128xf32>, vector<16x128xf32> -> vector<16x128xf32>
    %c2 = arith.constant 2 : index
    %c0_20 = arith.constant 0 : index
    %89 = vector.load %arg5[%c2, %c0_20] : memref<8x768xf32, #tpu.memory_space<vmem>>, vector<1x128xf32>
    %90 = vector.broadcast %89 : vector<1x128xf32> to vector<16x128xf32>
    %91 = arith.addf %88, %90 : vector<16x128xf32>
    %92 = math.tanh %91 : vector<16x128xf32>
    %93 = arith.truncf %92 : vector<16x128xf32> to vector<16x128xbf16>
    %c0_21 = arith.constant 0 : index
    %c0_22 = arith.constant 0 : index
    %94 = vector.load %arg6[%c0_21, %c0_22] : memref<16x128xbf16, #tpu.memory_space<vmem>>, vector<16x128xbf16>
    tpu.vector_store %arg6[%c0_21, %c0_22], %93 {strides = array<i32>} : memref<16x128xbf16, #tpu.memory_space<vmem>>, vector<16x128xbf16>,
    return
  }
  func.func @transform_0(%arg0: i32) -> (i32, i32) {
    %c0_i32 = arith.constant 0 : i32
    %c0_i32_0 = arith.constant 0 : i32
    return %arg0, %c0_i32 : i32, i32
  }
  func.func @transform_1(%arg0: i32) -> (i32, i32) {
    %c0_i32 = arith.constant 0 : i32
    %c0_i32_0 = arith.constant 0 : i32
    %c0_i32_1 = arith.constant 0 : i32
    return %c0_i32, %c0_i32_0 : i32, i32
  }
  func.func @transform_2(%arg0: i32) -> (i32, i32) {
    %c0_i32 = arith.constant 0 : i32
    %c0_i32_0 = arith.constant 0 : i32
    %c0_i32_1 = arith.constant 0 : i32
    return %c0_i32, %c0_i32_0 : i32, i32
  }
  func.func @transform_3(%arg0: i32) -> (i32, i32) {
    %c0_i32 = arith.constant 0 : i32
    %c0_i32_0 = arith.constant 0 : i32
    %c0_i32_1 = arith.constant 0 : i32
    return %c0_i32, %c0_i32_0 : i32, i32
  }
  func.func @transform_4(%arg0: i32) -> (i32, i32) {
    %c0_i32 = arith.constant 0 : i32
    %c0_i32_0 = arith.constant 0 : i32
    %c0_i32_1 = arith.constant 0 : i32
    return %c0_i32, %c0_i32_0 : i32, i32
  }
  func.func @transform_5(%arg0: i32) -> (i32, i32) {
    %c0_i32 = arith.constant 0 : i32
    %c0_i32_0 = arith.constant 0 : i32
    return %arg0, %c0_i32 : i32, i32
  }
}

</mosaic_0001>

<bundles_post_ra>
// kernel: tpu_custom_call.1
= control target key start
LH: loop header
LB: loop body
LE: loop exit
PB: predicated region body
PF: predicated region fallthrough
CT: control target
= control target key end

     0   :  { %10 = vsyncpa [#allocation3], 0  ;;  %s1599_s0 = inlined_call_operand.hbm [shape: f32[16,64], index: 0, kind: input, shape index: {}]   ;;  %s1600_s1 = inlined_call_operand.hbm [shape: f32[64,768], index: 1, kind: input, shape index: {}]   ;;  %s1601_s2 = inlined_call_operand.hbm [shape: f32[256,768], index: 2, kind: input, shape index: {}]   ;;  %s1602_s3 = inlined_call_operand.hbm [shape: f32[256,128], index: 3, kind: input, shape index: {}]   ;;  %s1603_s4 = inlined_call_operand.hbm [shape: f32[8,768], index: 4, kind: input, shape index: {}]   ;;  %s1604_s5 = inlined_call_operand.hbm [shape: bf16[16,128], index: 5, kind: output, shape index: {}]  }
   0x1   :  { %11 = vsyncpa [#allocation6], 0 }
   0x2   :  { %12 = vsyncpa [#allocation9], 0 }
   0x3   :  { %13 = vsyncpa [#allocation4], 0  ;;  %s1468_s18 = smov [#allocation5]  }
   0x4   :  { %s31_s19 = sshll.u32 %s1468_s18, 4  ;;  %s32_s19 = int_to_ptr.vmem [resolvable:$true] %s31_s19 }
   0x5   :  { %s1348_s20 = scalar_lea.vmem %s32_s19, 6144  ;;  %p1353_p1 = scmp.lt.s32.totalorder %s32_s19, %s32_s19 }
   0x6   :  { %p1349_p0 = scmp.ne.s32.totalorder %s32_s19, %s1348_s20  ;;  %p1354_p2 = scmp.lt.s32.totalorder %s1348_s20, %s1348_s20 }
   0x8   :  { %p1355_p3 = por %p1354_p2, %p1353_p1 }
   0xa   :  { %p1356_p4 = pnand %p1355_p3, %p1349_p0 }
   0xc   :  { %1359 = shalt.err (!%p1356_p4)
}
   0xd   :  { %s1469_s21 = smov 768   ;;  %s1470_s22 = smov 48  }
   0xe   :  { %37 = dma.hbm_to_vmem [thread:$0]  %s1600_s1, 6144, %s32_s19, [#allocation6], %s1469_s21, %s1469_s21, %s1470_s22  }
   0xf   :  { %s1471_s25 = smov [#allocation8]   ;;  %s1472_s27 = smov [#allocation2]  }
  0x10   :  { %s55_s26 = sshll.u32 %s1471_s25, 4  ;;  %s19_s28 = sshll.u32 %s1472_s27, 4  ;;  %s56_s26 = int_to_ptr.vmem [resolvable:$true] %s55_s26  ;;  %s20_s28 = int_to_ptr.vmem [resolvable:$true] %s19_s28 }
  0x11   :  { %s1368_s29 = scalar_lea.vmem %s56_s26, 4096  ;;  %p1373_p6 = scmp.lt.s32.totalorder %s56_s26, %s56_s26 }
  0x12   :  { %p1369_p5 = scmp.ne.s32.totalorder %s56_s26, %s1368_s29  ;;  %p1374_p7 = scmp.lt.s32.totalorder %s1368_s29, %s1368_s29 }
  0x14   :  { %p1375_p8 = por %p1374_p7, %p1373_p6 }
  0x16   :  { %p1376_p9 = pnand %p1375_p8, %p1369_p5 }
  0x18   :  { %1379 = shalt.err (!%p1376_p9)
}
  0x19   :  { %s1473_s30 = smov 128   ;;  %s1474_s6 = smov 8  }
  0x1a   :  { %61 = dma.hbm_to_vmem [thread:$0]  %s1602_s3, 4096, %s56_s26, [#allocation9], %s1473_s30, %s1473_s30, %s1474_s6  }
  0x1b   :  { %s1388_s1 = scalar_lea.vmem %s20_s28, 256  ;;  %p1393_p11 = scmp.lt.s32.totalorder %s20_s28, %s20_s28 }
  0x1c   :  { %p1389_p10 = scmp.ne.s32.totalorder %s20_s28, %s1388_s1  ;;  %p1394_p12 = scmp.lt.s32.totalorder %s1388_s1, %s1388_s1 }
  0x1e   :  { %p1395_p13 = por %p1394_p12, %p1393_p11 }
  0x20   :  { %p1396_p0 = pnand %p1395_p13, %p1389_p10 }
  0x22   :  { %1399 = shalt.err (!%p1396_p0)
}
  0x23   :  { %25 = dma.hbm_to_vmem [thread:$0]  %s1599_s0, 256, %s20_s28, [#allocation3], %s1473_s30, %s1473_s30, %s1474_s6  }
  0x24   :  { %s1475_s11 = smov [#allocation7]   ;;  %s1476_s13 = smov [#allocation10]  }
  0x25   :  { %s43_s12 = sshll.u32 %s1475_s11, 4  ;;  %s68_s14 = sshll.u32 %s1476_s13, 4  ;;  %s44_s12 = int_to_ptr.vmem [resolvable:$true] %s43_s12  ;;  %s69_s14 = int_to_ptr.vmem [resolvable:$true] %s68_s14 }
  0x26   :  { %s1408_s15 = scalar_lea.vmem %s44_s12, 24576  ;;  %p1413_p2 = scmp.lt.s32.totalorder %s44_s12, %s44_s12 }
  0x27   :  { %p1409_p1 = scmp.ne.s32.totalorder %s44_s12, %s1408_s15  ;;  %p1414_p3 = scmp.lt.s32.totalorder %s1408_s15, %s1408_s15 }
  0x29   :  { %p1415_p4 = por %p1414_p3, %p1413_p2 }
  0x2b   :  { %p1416_p5 = pnand %p1415_p4, %p1409_p1 }
  0x2d   :  { %1419 = shalt.err (!%p1416_p5)
}
  0x2e   :  { %49 = dma.hbm_to_vmem [thread:$0]  %s1601_s2, 24576, %s44_s12, [#allocation6], %s1469_s21, %s1469_s21, %s1470_s22  }
  0x2f   :  { %s1428_s0 = scalar_lea.vmem %s69_s14, 768  ;;  %p1433_p7 = scmp.lt.s32.totalorder %s69_s14, %s69_s14 }
  0x30   :  { %p1429_p6 = scmp.ne.s32.totalorder %s69_s14, %s1428_s0  ;;  %p1434_p8 = scmp.lt.s32.totalorder %s1428_s0, %s1428_s0 }
  0x32   :  { %p1435_p9 = por %p1434_p8, %p1433_p7 }
  0x34   :  { %p1436_p10 = pnand %p1435_p9, %p1429_p6 }
  0x36   :  { %1439 = shalt.err (!%p1436_p10)
}
  0x37   :  { %71 = dma.hbm_to_vmem [thread:$0]  %s1603_s4, 768, %s69_s14, [#allocation9]  }
  0x38   :  { %1460 = dma.done.wait [#allocation3], 256  }
  0x39   :  { %1461 = vsyncadd [#allocation3], 4294967040 }
  0x3a   :  { %1462 = dma.done.wait [#allocation6], 30720  }
  0x3b   :  { %1463 = vsyncadd [#allocation6], 4294936576 }
  0x3c   :  { %1464 = dma.done.wait [#allocation9], 4864  }
  0x3d   :  { %1465 = vsyncadd [#allocation9], 4294962432  ;;  %v1477_v0 = vmov 0.0   ;;  %v132_v1 = vld [vmem:[#allocation5 + $0x158] sm:$0xff]  ;;  %v134_v2 = vld [vmem:[#allocation5 + $0x168] sm:$0xff]  ;;  %vm171_vm0 = vcmask 523264  }
  0x3e   :  { %242 = vmatprep.mubr.f32.mxu0 %v1477_v0  ;;  %319 = vmatprep.mubr.f32.mxu1 %v1477_v0  ;;  %v131_v3 = vld [vmem:[#allocation5 + $0x150] sm:$0xff]  ;;  %v133_v4 = vld [vmem:[#allocation5 + $0x160] sm:$0xff]  ;;  %v126_v5 = vld [vmem:[#allocation5 + $0x128] sm:$0xff]  ;;  %s1478_s2 = smov [#allocation11]  }
  0x3f   :  { %194 = vmatprep.subr.mxu0 %v132_v1  ;;  %271 = vmatprep.subr.mxu1 %v134_v2  ;;  %v128_v6 = vld [vmem:[#allocation5 + $0x138] sm:$0xff]  ;;  %v125_v7 = vld [vmem:[#allocation5 + $0x120] sm:$0xff]  ;;  %v127_v8 = vld [vmem:[#allocation5 + $0x130] sm:$0xff]  ;;  %s1128_s4 = sshll.u32 %s1478_s2, 4  ;;  %s1129_s4 = int_to_ptr.vmem [resolvable:$true] %s1128_s4 }
  0x40   :  { %195 = vmatpush1.msra.mxu0 %v131_v3  ;;  %272 = vmatpush1.msra.mxu1 %v133_v4  ;;  %v120_v9 = vld [vmem:[#allocation5 + $0xf8] sm:$0xff]  ;;  %v122_v10 = vld [vmem:[#allocation5 + $0x108] sm:$0xff]  ;;  %v119_v11 = vld [vmem:[#allocation5 + $0xf0] sm:$0xff]  ;;  %s1440_s19 = scalar_lea.vmem %s1129_s4, 128  ;;  %p1445_p12 = scmp.lt.s32.totalorder %s1129_s4, %s1129_s4 }
  0x41   :  { %196 = vmatprep.subr.mxu0 %v126_v5  ;;  %273 = vmatprep.subr.mxu1 %v128_v6  ;;  %v121_v12 = vld [vmem:[#allocation5 + $0x100] sm:$0xff]  ;;  %v114_v13 = vld [vmem:[#allocation5 + $0xc8] sm:$0xff]  ;;  %v116_v14 = vld [vmem:[#allocation5 + $0xd8] sm:$0xff]  ;;  %p1441_p11 = scmp.ne.s32.totalorder %s1129_s4, %s1440_s19  ;;  %p1446_p13 = scmp.lt.s32.totalorder %s1440_s19, %s1440_s19 }
  0x42   :  { %197 = vmatpush1.msra.mxu0 %v125_v7  ;;  %274 = vmatpush1.msra.mxu1 %v127_v8  ;;  %v113_v15 = vld [vmem:[#allocation5 + $0xc0] sm:$0xff]  ;;  %v115_v16 = vld [vmem:[#allocation5 + $0xd0] sm:$0xff]  ;;  %v108_v17 = vld [vmem:[#allocation5 + $0x98] sm:$0xff] }
  0x43   :  { %198 = vmatprep.subr.mxu0 %v120_v9  ;;  %275 = vmatprep.subr.mxu1 %v122_v10  ;;  %v110_v18 = vld [vmem:[#allocation5 + $0xa8] sm:$0xff]  ;;  %v107_v19 = vld [vmem:[#allocation5 + $0x90] sm:$0xff]  ;;  %v109_v20 = vld [vmem:[#allocation5 + $0xa0] sm:$0xff]  ;;  %p1447_p0 = por %p1446_p13, %p1445_p12 }
  0x44   :  { %199 = vmatpush1.msra.mxu0 %v119_v11  ;;  %276 = vmatpush1.msra.mxu1 %v121_v12  ;;  %v102_v21 = vld [vmem:[#allocation5 + $0x68] sm:$0xff]  ;;  %v104_v22 = vld [vmem:[#allocation5 + $0x78] sm:$0xff]  ;;  %v101_v23 = vld [vmem:[#allocation5 + $0x60] sm:$0xff] }
  0x45   :  { %200 = vmatprep.subr.mxu0 %v114_v13  ;;  %277 = vmatprep.subr.mxu1 %v116_v14  ;;  %v103_v24 = vld [vmem:[#allocation5 + $0x70] sm:$0xff]  ;;  %v96_v25 = vld [vmem:[#allocation5 + $0x38] sm:$0xff]  ;;  %v98_v26 = vld [vmem:[#allocation5 + $0x48] sm:$0xff]  ;;  %p1448_p1 = pnand %p1447_p0, %p1441_p11 }
  0x46   :  { %201 = vmatpush1.msra.mxu0 %v113_v15  ;;  %278 = vmatpush1.msra.mxu1 %v115_v16  ;;  %v95_v27 = vld [vmem:[#allocation5 + $0x30] sm:$0xff]  ;;  %v97_v28 = vld [vmem:[#allocation5 + $0x40] sm:$0xff]  ;;  %v90_v29 = vld [vmem:[#allocation5 + $0x8] sm:$0xff] }
  0x47   :  { %202 = vmatprep.subr.mxu0 %v108_v17  ;;  %279 = vmatprep.subr.mxu1 %v110_v18  ;;  %v92_v30 = vld [vmem:[#allocation5 + $0x18] sm:$0xff]  ;;  %v89_v31 = vld [vmem:[#allocation5] sm:$0xff]  ;;  %v91_v32 = vld [vmem:[#allocation5 + $0x10] sm:$0xff] }
  0x48   :  { %203 = vmatpush1.msra.mxu0 %v107_v19  ;;  %280 = vmatpush1.msra.mxu1 %v109_v20  ;;  %v1534_v33 = vld [vmem:[#allocation2] sm:$0xff]  ;;  %v136_v34 = vld [vmem:[#allocation5 + $0x178] sm:$0xff]  ;;  %v130_v36 = vld [vmem:[#allocation5 + $0x148] sm:$0xff] }
  0x49   :  { %204 = vmatprep.subr.mxu0 %v102_v21  ;;  %281 = vmatprep.subr.mxu1 %v104_v22  ;;  %v135_v35 = vld [vmem:[#allocation5 + $0x170] sm:$0xff]  ;;  %v564_v37 = vld [vmem:[#allocation7 + $0x2d8] sm:$0xff]  ;;  %v129_v38 = vld [vmem:[#allocation5 + $0x140] sm:$0xff] }
  0x4a   :  { %205 = vmatpush1.msra.mxu0 %v101_v23  ;;  %282 = vmatpush1.msra.mxu1 %v103_v24  ;;  %v88_v39 = vld [vmem:[#allocation2 + $0x8] sm:$0xff]  ;;  %v123_v41 = vld [vmem:[#allocation5 + $0x110] sm:$0xff]  ;;  %v118_v42 = vld [vmem:[#allocation5 + $0xe8] sm:$0xff] }
  0x4b   :  { %206 = vmatprep.subr.mxu0 %v96_v25  ;;  %283 = vmatprep.subr.mxu1 %v98_v26  ;;  %v124_v40 = vld [vmem:[#allocation5 + $0x118] sm:$0xff]  ;;  %v563_v43 = vld [vmem:[#allocation7 + $0x2d0] sm:$0xff]  ;;  %v117_v44 = vld [vmem:[#allocation5 + $0xe0] sm:$0xff] }
  0x4c   :  { %207 = vmatpush1.msra.mxu0 %v95_v27  ;;  %284 = vmatpush1.msra.mxu1 %v97_v28  ;;  %v558_v45 = vld [vmem:[#allocation7 + $0x2a8] sm:$0xff]  ;;  %v112_v46 = vld [vmem:[#allocation5 + $0xb8] sm:$0xff]  ;;  %v557_v47 = vld [vmem:[#allocation7 + $0x2a0] sm:$0xff] }
  0x4d   :  { %208 = vmatprep.subr.mxu0 %v90_v29  ;;  %285 = vmatprep.subr.mxu1 %v92_v30  ;;  %v111_v48 = vld [vmem:[#allocation5 + $0xb0] sm:$0xff]  ;;  %v552_v49 = vld [vmem:[#allocation7 + $0x278] sm:$0xff]  ;;  %v106_v50 = vld [vmem:[#allocation5 + $0x88] sm:$0xff] }
  0x4e   :  { %209 = vmatpush1.msra.mxu0 %v89_v31  ;;  %286 = vmatpush1.msra.mxu1 %v91_v32  ;;  %v551_v51 = vld [vmem:[#allocation7 + $0x270] sm:$0xff]  ;;  %v105_v52 = vld [vmem:[#allocation5 + $0x80] sm:$0xff]  ;;  %v546_v53 = vld [vmem:[#allocation7 + $0x248] sm:$0xff] }
  0x4f   :  { %1142 = vmatmul.mubr.msk.f32.vlgmr.msra.gmra.mxu0 %vm171_vm0, %v1534_v33  ;;  %1144 = vmatmul.mubr.msk.f32.vlgmr.msra.gmra.mxu1 %vm171_vm0, %v1534_v33  ;;  %v100_v54 = vld [vmem:[#allocation5 + $0x58] sm:$0xff]  ;;  %v545_v55 = vld [vmem:[#allocation7 + $0x240] sm:$0xff]  ;;  %v99_v56 = vld [vmem:[#allocation5 + $0x50] sm:$0xff] }
  0x50   :  { %348 = vmatprep.subr.mxu0 %v136_v34  ;;  %248 = vmatprep.mubr.f32.mxu0 %v1477_v0  ;;  %v540_v57 = vld [vmem:[#allocation7 + $0x218] sm:$0xff]  ;;  %v94_v58 = vld [vmem:[#allocation5 + $0x28] sm:$0xff]  ;;  %v93_v59 = vld [vmem:[#allocation5 + $0x20] sm:$0xff] }
  0x51   :  { %349 = vmatpush1.msra.mxu0 %v135_v35  ;;  %325 = vmatprep.mubr.f32.mxu1 %v1477_v0  ;;  %v566_v60 = vld [vmem:[#allocation7 + $0x2e8] sm:$0xff]  ;;  %v565_v61 = vld [vmem:[#allocation7 + $0x2e0] sm:$0xff]  ;;  %v560_v62 = vld [vmem:[#allocation7 + $0x2b8] sm:$0xff] }
  0x52   :  { %350 = vmatprep.subr.mxu0 %v130_v36  ;;  %700 = vmatprep.subr.mxu1 %v564_v37  ;;  %v559_v63 = vld [vmem:[#allocation7 + $0x2b0] sm:$0xff]  ;;  %v554_v1 = vld [vmem:[#allocation7 + $0x288] sm:$0xff]  ;;  %v553_v2 = vld [vmem:[#allocation7 + $0x280] sm:$0xff] }
  0x53   :  { %351 = vmatpush1.msra.mxu0 %v129_v38  ;;  %1145 = vmatmul.mubr.msk.f32.gmra.mxu1 %vm171_vm0, %v88_v39  ;;  %v548_v3 = vld [vmem:[#allocation7 + $0x258] sm:$0xff]  ;;  %v547_v4 = vld [vmem:[#allocation7 + $0x250] sm:$0xff]  ;;  %v542_v6 = vld [vmem:[#allocation7 + $0x228] sm:$0xff] }
  0x54   :  { %1143 = vmatmul.mubr.msk.f32.gmra.mxu0 %vm171_vm0, %v88_v39  ;;  %352 = vmatprep.subr.mxu0 %v124_v40  ;;  %v539_v5 = vld [vmem:[#allocation7 + $0x210] sm:$0xff]  ;;  %v534_v7 = vld [vmem:[#allocation7 + $0x1e8] sm:$0xff]  ;;  %v541_v8 = vld [vmem:[#allocation7 + $0x220] sm:$0xff] }
  0x55   :  { %353 = vmatpush1.msra.mxu0 %v123_v41  ;;  %396 = vmatprep.mubr.f32.mxu0 %v1477_v0  ;;  %v536_v9 = vld [vmem:[#allocation7 + $0x1f8] sm:$0xff]  ;;  %v535_v11 = vld [vmem:[#allocation7 + $0x1f0] sm:$0xff]  ;;  %v530_v13 = vld [vmem:[#allocation7 + $0x1c8] sm:$0xff] }
  0x56   :  { %354 = vmatprep.subr.mxu0 %v118_v42  ;;  %701 = vmatpush1.msra.mxu1 %v563_v43  ;;  %v528_v10 = vld [vmem:[#allocation7 + $0x1b8] sm:$0xff]  ;;  %v527_v12 = vld [vmem:[#allocation7 + $0x1b0] sm:$0xff]  ;;  %v522_v14 = vld [vmem:[#allocation7 + $0x188] sm:$0xff] }
  0x57   :  { %355 = vmatpush1.msra.mxu0 %v117_v44  ;;  %702 = vmatprep.subr.mxu1 %v558_v45  ;;  %v529_v15 = vld [vmem:[#allocation7 + $0x1c0] sm:$0xff]  ;;  %v524_v17 = vld [vmem:[#allocation7 + $0x198] sm:$0xff]  ;;  %v523_v19 = vld [vmem:[#allocation7 + $0x190] sm:$0xff] }
  0x58   :  { %356 = vmatprep.subr.mxu0 %v112_v46  ;;  %703 = vmatpush1.msra.mxu1 %v557_v47  ;;  %v521_v16 = vld [vmem:[#allocation7 + $0x180] sm:$0xff]  ;;  %v516_v18 = vld [vmem:[#allocation7 + $0x158] sm:$0xff]  ;;  %v515_v20 = vld [vmem:[#allocation7 + $0x150] sm:$0xff] }
  0x59   :  { %357 = vmatpush1.msra.mxu0 %v111_v48  ;;  %704 = vmatprep.subr.mxu1 %v552_v49  ;;  %v518_v21 = vld [vmem:[#allocation7 + $0x168] sm:$0xff]  ;;  %v517_v23 = vld [vmem:[#allocation7 + $0x160] sm:$0xff]  ;;  %v512_v25 = vld [vmem:[#allocation7 + $0x138] sm:$0xff] }
  0x5a   :  { %358 = vmatprep.subr.mxu0 %v106_v50  ;;  %705 = vmatpush1.msra.mxu1 %v551_v51  ;;  %v510_v22 = vld [vmem:[#allocation7 + $0x128] sm:$0xff]  ;;  %v509_v24 = vld [vmem:[#allocation7 + $0x120] sm:$0xff]  ;;  %v504_v26 = vld [vmem:[#allocation7 + $0xf8] sm:$0xff] }
  0x5b   :  { %359 = vmatpush1.msra.mxu0 %v105_v52  ;;  %706 = vmatprep.subr.mxu1 %v546_v53  ;;  %v511_v27 = vld [vmem:[#allocation7 + $0x130] sm:$0xff]  ;;  %v506_v29 = vld [vmem:[#allocation7 + $0x108] sm:$0xff]  ;;  %v505_v31 = vld [vmem:[#allocation7 + $0x100] sm:$0xff] }
  0x5c   :  { %360 = vmatprep.subr.mxu0 %v100_v54  ;;  %707 = vmatpush1.msra.mxu1 %v545_v55  ;;  %v503_v28 = vld [vmem:[#allocation7 + $0xf0] sm:$0xff]  ;;  %v498_v30 = vld [vmem:[#allocation7 + $0xc8] sm:$0xff]  ;;  %v497_v32 = vld [vmem:[#allocation7 + $0xc0] sm:$0xff] }
  0x5d   :  { %361 = vmatpush1.msra.mxu0 %v99_v56  ;;  %708 = vmatprep.subr.mxu1 %v540_v57  ;;  %v492_v34 = vld [vmem:[#allocation7 + $0x98] sm:$0xff]  ;;  %v499_v35 = vld [vmem:[#allocation7 + $0xd0] sm:$0xff]  ;;  %v494_v37 = vld [vmem:[#allocation7 + $0xa8] sm:$0xff] }
  0x5e   :  { %362 = vmatprep.subr.mxu0 %v94_v58  ;;  %709 = vmatpush1.msra.mxu1 %v539_v5  ;;  %v491_v36 = vld [vmem:[#allocation7 + $0x90] sm:$0xff]  ;;  %v486_v38 = vld [vmem:[#allocation7 + $0x68] sm:$0xff]  ;;  %v485_v40 = vld [vmem:[#allocation7 + $0x60] sm:$0xff] }
  0x5f   :  { %363 = vmatpush1.msra.mxu0 %v93_v59  ;;  %710 = vmatprep.subr.mxu1 %v534_v7  ;;  %v488_v41 = vld [vmem:[#allocation7 + $0x78] sm:$0xff]  ;;  %v487_v43 = vld [vmem:[#allocation7 + $0x70] sm:$0xff]  ;;  %v482_v45 = vld [vmem:[#allocation7 + $0x48] sm:$0xff] }
  0x60   :  { %1146 = vmatmul.mubr.msk.f32.vlgmr.msra.gmra.mxu0 %vm171_vm0, %v1534_v33  ;;  %777 = vmatprep.subr.mxu0 %v566_v60  ;;  %v500_v33 = vld [vmem:[#allocation7 + $0xd8] sm:$0xff]  ;;  %v479_v44 = vld [vmem:[#allocation7 + $0x30] sm:$0xff]  ;;  %v474_v46 = vld [vmem:[#allocation7 + $0x8] sm:$0xff] }
  0x61   :  { %402 = vmatprep.mubr.f32.mxu0 %v1477_v0  ;;  %778 = vmatpush1.msra.mxu0 %v565_v61  ;;  %v533_v0 = vld [vmem:[#allocation7 + $0x1e0] sm:$0xff]  ;;  %v480_v42 = vld [vmem:[#allocation7 + $0x38] sm:$0xff]  ;;  %v475_v51 = vld [vmem:[#allocation7 + $0x10] sm:$0xff] }
  0x62   :  { %779 = vmatprep.subr.mxu0 %v560_v62  ;;  %711 = vmatpush1.msra.mxu1 %v533_v0  ;;  %v481_v47 = vld [vmem:[#allocation7 + $0x40] sm:$0xff]  ;;  %v476_v49 = vld [vmem:[#allocation7 + $0x18] sm:$0xff]  ;;  %v659_v52 = vld [vmem:[#allocation7 + $0x5d0] sm:$0xff] }
  0x63   :  { %780 = vmatpush1.msra.mxu0 %v559_v63  ;;  %712 = vmatprep.subr.mxu1 %v528_v10  ;;  %v473_v48 = vld [vmem:[#allocation7] sm:$0xff]  ;;  %v660_v50 = vld [vmem:[#allocation7 + $0x5d8] sm:$0xff]  ;;  %v662_v53 = vld [vmem:[#allocation7 + $0x5e8] sm:$0xff] }
  0x64   :  { %1147 = vmatmul.mubr.msk.f32.gmra.mxu0 %vm171_vm0, %v88_v39  ;;  %781 = vmatprep.subr.mxu0 %v554_v1  ;;  %v493_v39 = vld [vmem:[#allocation7 + $0xa0] sm:$0xff]  ;;  %v654_v54 = vld [vmem:[#allocation7 + $0x5a8] sm:$0xff]  ;;  %v656_v57 = vld [vmem:[#allocation7 + $0x5b8] sm:$0xff] }
  0x65   :  { %782 = vmatpush1.msra.mxu0 %v553_v2  ;;  %713 = vmatpush1.msra.mxu1 %v527_v12  ;;  %v661_v55 = vld [vmem:[#allocation7 + $0x5e0] sm:$0xff]  ;;  %v648_v58 = vld [vmem:[#allocation7 + $0x578] sm:$0xff]  ;;  %v655_v59 = vld [vmem:[#allocation7 + $0x5b0] sm:$0xff] }
  0x66   :  { %783 = vmatprep.subr.mxu0 %v548_v3  ;;  %714 = vmatprep.subr.mxu1 %v522_v14  ;;  %v653_v56 = vld [vmem:[#allocation7 + $0x5a0] sm:$0xff]  ;;  %v647_v60 = vld [vmem:[#allocation7 + $0x570] sm:$0xff]  ;;  %v650_v61 = vld [vmem:[#allocation7 + $0x588] sm:$0xff] }
  0x67   :  { %784 = vmatpush1.msra.mxu0 %v547_v4  ;;  %715 = vmatpush1.msra.mxu1 %v521_v16  ;;  %v642_v62 = vld [vmem:[#allocation7 + $0x548] sm:$0xff]  ;;  %v649_v63 = vld [vmem:[#allocation7 + $0x580] sm:$0xff]  ;;  %v644_v2 = vld [vmem:[#allocation7 + $0x558] sm:$0xff] }
  0x68   :  { %785 = vmatprep.subr.mxu0 %v542_v6  ;;  %716 = vmatprep.subr.mxu1 %v516_v18  ;;  %v641_v1 = vld [vmem:[#allocation7 + $0x540] sm:$0xff]  ;;  %v636_v3 = vld [vmem:[#allocation7 + $0x518] sm:$0xff]  ;;  %v643_v4 = vld [vmem:[#allocation7 + $0x550] sm:$0xff] }
  0x69   :  { %786 = vmatpush1.msra.mxu0 %v541_v8  ;;  %717 = vmatpush1.msra.mxu1 %v515_v20  ;;  %v635_v5 = vld [vmem:[#allocation7 + $0x510] sm:$0xff]  ;;  %v638_v6 = vld [vmem:[#allocation7 + $0x528] sm:$0xff]  ;;  %v637_v8 = vld [vmem:[#allocation7 + $0x520] sm:$0xff] }
  0x6a   :  { %787 = vmatprep.subr.mxu0 %v536_v9  ;;  %718 = vmatprep.subr.mxu1 %v510_v22  ;;  %v630_v7 = vld [vmem:[#allocation7 + $0x4e8] sm:$0xff]  ;;  %v629_v0 = vld [vmem:[#allocation7 + $0x4e0] sm:$0xff]  ;;  %v632_v9 = vld [vmem:[#allocation7 + $0x4f8] sm:$0xff] }
  0x6b   :  { %788 = vmatpush1.msra.mxu0 %v535_v11  ;;  %719 = vmatpush1.msra.mxu1 %v509_v24  ;;  %v624_v10 = vld [vmem:[#allocation7 + $0x4b8] sm:$0xff]  ;;  %v631_v11 = vld [vmem:[#allocation7 + $0x4f0] sm:$0xff]  ;;  %v618_v14 = vld [vmem:[#allocation7 + $0x488] sm:$0xff] }
  0x6c   :  { %789 = vmatprep.subr.mxu0 %v530_v13  ;;  %720 = vmatprep.subr.mxu1 %v504_v26  ;;  %v623_v12 = vld [vmem:[#allocation7 + $0x4b0] sm:$0xff]  ;;  %v626_v13 = vld [vmem:[#allocation7 + $0x4c8] sm:$0xff]  ;;  %v617_v16 = vld [vmem:[#allocation7 + $0x480] sm:$0xff] }
  0x6d   :  { %790 = vmatpush1.msra.mxu0 %v529_v15  ;;  %721 = vmatpush1.msra.mxu1 %v503_v28  ;;  %v625_v15 = vld [vmem:[#allocation7 + $0x4c0] sm:$0xff]  ;;  %v612_v18 = vld [vmem:[#allocation7 + $0x458] sm:$0xff]  ;;  %v611_v20 = vld [vmem:[#allocation7 + $0x450] sm:$0xff] }
  0x6e   :  { %791 = vmatprep.subr.mxu0 %v524_v17  ;;  %722 = vmatprep.subr.mxu1 %v498_v30  ;;  %v620_v17 = vld [vmem:[#allocation7 + $0x498] sm:$0xff]  ;;  %v606_v22 = vld [vmem:[#allocation7 + $0x428] sm:$0xff]  ;;  %v605_v24 = vld [vmem:[#allocation7 + $0x420] sm:$0xff] }
  0x6f   :  { %792 = vmatpush1.msra.mxu0 %v523_v19  ;;  %723 = vmatpush1.msra.mxu1 %v497_v32  ;;  %v619_v19 = vld [vmem:[#allocation7 + $0x490] sm:$0xff]  ;;  %v600_v26 = vld [vmem:[#allocation7 + $0x3f8] sm:$0xff]  ;;  %v594_v30 = vld [vmem:[#allocation7 + $0x3c8] sm:$0xff] }
  0x70   :  { %793 = vmatprep.subr.mxu0 %v518_v21  ;;  %724 = vmatprep.subr.mxu1 %v492_v34  ;;  %v614_v21 = vld [vmem:[#allocation7 + $0x468] sm:$0xff]  ;;  %v599_v28 = vld [vmem:[#allocation7 + $0x3f0] sm:$0xff]  ;;  %v593_v32 = vld [vmem:[#allocation7 + $0x3c0] sm:$0xff] }
  0x71   :  { %794 = vmatpush1.msra.mxu0 %v517_v23  ;;  %725 = vmatpush1.msra.mxu1 %v491_v36  ;;  %v613_v23 = vld [vmem:[#allocation7 + $0x460] sm:$0xff]  ;;  %v588_v34 = vld [vmem:[#allocation7 + $0x398] sm:$0xff]  ;;  %v587_v36 = vld [vmem:[#allocation7 + $0x390] sm:$0xff] }
  0x72   :  { %795 = vmatprep.subr.mxu0 %v512_v25  ;;  %726 = vmatprep.subr.mxu1 %v486_v38  ;;  %v608_v25 = vld [vmem:[#allocation7 + $0x438] sm:$0xff]  ;;  %v582_v38 = vld [vmem:[#allocation7 + $0x368] sm:$0xff] }
  0x73   :  { %796 = vmatpush1.msra.mxu0 %v511_v27  ;;  %727 = vmatpush1.msra.mxu1 %v485_v40  ;;  %v607_v27 = vld [vmem:[#allocation7 + $0x430] sm:$0xff]  ;;  %v581_v40 = vld [vmem:[#allocation7 + $0x360] sm:$0xff] }
  0x74   :  { %797 = vmatprep.subr.mxu0 %v506_v29  ;;  %728 = vmatprep.subr.mxu1 %v480_v42  ;;  %v602_v29 = vld [vmem:[#allocation7 + $0x408] sm:$0xff]  ;;  %v576_v42 = vld [vmem:[#allocation7 + $0x338] sm:$0xff] }
  0x75   :  { %798 = vmatpush1.msra.mxu0 %v505_v31  ;;  %729 = vmatpush1.msra.mxu1 %v479_v44  ;;  %v601_v31 = vld [vmem:[#allocation7 + $0x400] sm:$0xff]  ;;  %v575_v44 = vld [vmem:[#allocation7 + $0x330] sm:$0xff] }
  0x76   :  { %799 = vmatprep.subr.mxu0 %v500_v33  ;;  %730 = vmatprep.subr.mxu1 %v474_v46  ;;  %v596_v33 = vld [vmem:[#allocation7 + $0x3d8] sm:$0xff]  ;;  %v570_v46 = vld [vmem:[#allocation7 + $0x308] sm:$0xff] }
  0x77   :  { %800 = vmatpush1.msra.mxu0 %v499_v35  ;;  %731 = vmatpush1.msra.mxu1 %v473_v48  ;;  %v595_v35 = vld [vmem:[#allocation7 + $0x3d0] sm:$0xff]  ;;  %v569_v48 = vld [vmem:[#allocation7 + $0x300] sm:$0xff] }
  0x78   :  { %801 = vmatprep.subr.mxu0 %v494_v37  ;;  %732 = vmatprep.subr.mxu1 %v660_v50  ;;  %v590_v37 = vld [vmem:[#allocation7 + $0x3a8] sm:$0xff]  ;;  %v571_v50 = vld [vmem:[#allocation7 + $0x310] sm:$0xff] }
  0x79   :  { %802 = vmatpush1.msra.mxu0 %v493_v39  ;;  %733 = vmatpush2.msra.mxu1 %v659_v52  ;;  %v589_v39 = vld [vmem:[#allocation7 + $0x3a0] sm:$0xff]  ;;  %v141_v52 = vlaneseq }
  0x7a   :  { %803 = vmatprep.subr.mxu0 %v488_v41  ;;  %734 = vmatprep.subr.mxu1 %v654_v54  ;;  %v584_v41 = vld [vmem:[#allocation7 + $0x378] sm:$0xff] }
  0x7b   :  { %804 = vmatpush1.msra.mxu0 %v487_v43  ;;  %735 = vmatpush2.msra.mxu1 %v653_v56  ;;  %v583_v43 = vld [vmem:[#allocation7 + $0x370] sm:$0xff] }
  0x7c   :  { %805 = vmatprep.subr.mxu0 %v482_v45  ;;  %736 = vmatprep.subr.mxu1 %v648_v58  ;;  %v578_v45 = vld [vmem:[#allocation7 + $0x348] sm:$0xff] }
  0x7d   :  { %806 = vmatpush1.msra.mxu0 %v481_v47  ;;  %737 = vmatpush2.msra.mxu1 %v647_v60  ;;  %v577_v47 = vld [vmem:[#allocation7 + $0x340] sm:$0xff] }
  0x7e   :  { %807 = vmatprep.subr.mxu0 %v476_v49  ;;  %738 = vmatprep.subr.mxu1 %v642_v62  ;;  %v572_v49 = vld [vmem:[#allocation7 + $0x318] sm:$0xff] }
  0x7f   :  { %808 = vmatpush1.msra.mxu0 %v475_v51  ;;  %739 = vmatpush2.msra.mxu1 %v641_v1  ;;  %v568_v51 = vld [vmem:[#allocation7 + $0x2f8] sm:$0xff] }
  0x80   :  { %809 = vmatprep.subr.mxu0 %v662_v53  ;;  %740 = vmatprep.subr.mxu1 %v636_v3  ;;  %v1549_v53 = vshrl.u32 %v141_v52, 7  ;;  %v137_v54 = vld [vmem:[#allocation10] ss:$8 sm:$0xf] }
  0x81   :  { %810 = vmatpush2.msra.mxu0 %v661_v55  ;;  %741 = vmatpush2.msra.mxu1 %v635_v5  ;;  %v138_v55 = vld [vmem:[#allocation10] ss:$8 sm:$0x30] }
  0x82   :  { %811 = vmatprep.subr.mxu0 %v656_v57  ;;  %742 = vmatprep.subr.mxu1 %v630_v7  ;;  %v139_v56 = vor.u32 %v138_v55, %v137_v54  ;;  %v143_v57 = vsub.s32 0, %v1549_v53  ;;  %v155_v58 = vsub.s32 3, %v1549_v53 }
  0x83   :  { %812 = vmatpush2.msra.mxu0 %v655_v59  ;;  %743 = vmatpush2.msra.mxu1 %v629_v0 }
  0x84   :  { %813 = vmatprep.subr.mxu0 %v650_v61  ;;  %744 = vmatprep.subr.mxu1 %v624_v10  ;;  %v144_v59 = vrot.slane %v139_v56, %v143_v57  ;;  %v156_v60 = vrot.slane %v139_v56, %v155_v58 }
  0x85   :  { %814 = vmatpush2.msra.mxu0 %v649_v63  ;;  %745 = vmatpush2.msra.mxu1 %v623_v12  ;;  %v147_v12 = vsub.s32 1, %v1549_v53 }
  0x86   :  { %815 = vmatprep.subr.mxu0 %v644_v2  ;;  %746 = vmatprep.subr.mxu1 %v618_v14 }
  0x87   :  { %816 = vmatpush2.msra.mxu0 %v643_v4  ;;  %747 = vmatpush2.msra.mxu1 %v617_v16  ;;  %v151_v4 = vsub.s32 2, %v1549_v53 }
  0x88   :  { %817 = vmatprep.subr.mxu0 %v638_v6  ;;  %748 = vmatprep.subr.mxu1 %v612_v18  ;;  %v163_v18 = vsub.s32 5, %v1549_v53 }
  0x89   :  { %818 = vmatpush2.msra.mxu0 %v637_v8  ;;  %749 = vmatpush2.msra.mxu1 %v611_v20  ;;  %v152_v10 = vrot.slane %v139_v56, %v151_v4 }
  0x8a   :  { %819 = vmatprep.subr.mxu0 %v632_v9  ;;  %750 = vmatprep.subr.mxu1 %v606_v22 }
  0x8b   :  { %820 = vmatpush2.msra.mxu0 %v631_v11  ;;  %751 = vmatpush2.msra.mxu1 %v605_v24  ;;  %v164_v24 = vrot.slane %v139_v56, %v163_v18 }
  0x8c   :  { %821 = vmatprep.subr.mxu0 %v626_v13  ;;  %752 = vmatprep.subr.mxu1 %v600_v26 }
  0x8d   :  { %822 = vmatpush2.msra.mxu0 %v625_v15  ;;  %753 = vmatpush2.msra.mxu1 %v599_v28  ;;  %v159_v15 = vsub.s32 4, %v1549_v53 }
  0x8e   :  { %823 = vmatprep.subr.mxu0 %v620_v17  ;;  %754 = vmatprep.subr.mxu1 %v594_v30  ;;  %v148_v17 = vrot.slane %v139_v56, %v147_v12 }
  0x8f   :  { %824 = vmatpush2.msra.mxu0 %v619_v19  ;;  %755 = vmatpush2.msra.mxu1 %v593_v32  ;;  %v160_v20 = vrot.slane %v139_v56, %v159_v15 }
  0x90   :  { %825 = vmatprep.subr.mxu0 %v614_v21  ;;  %756 = vmatprep.subr.mxu1 %v588_v34 }
  0x91   :  { %826 = vmatpush2.msra.mxu0 %v613_v23  ;;  %757 = vmatpush2.msra.mxu1 %v587_v36 }
  0x92   :  { %827 = vmatprep.subr.mxu0 %v608_v25  ;;  %758 = vmatprep.subr.mxu1 %v582_v38 }
  0x93   :  { %828 = vmatpush2.msra.mxu0 %v607_v27  ;;  %759 = vmatpush2.msra.mxu1 %v581_v40 }
  0x94   :  { %829 = vmatprep.subr.mxu0 %v602_v29  ;;  %760 = vmatprep.subr.mxu1 %v576_v42 }
  0x95   :  { %830 = vmatpush2.msra.mxu0 %v601_v31  ;;  %761 = vmatpush2.msra.mxu1 %v575_v44 }
  0x96   :  { %831 = vmatprep.subr.mxu0 %v596_v33  ;;  %762 = vmatprep.subr.mxu1 %v570_v46 }
  0x97   :  { %832 = vmatpush2.msra.mxu0 %v595_v35  ;;  %763 = vmatpush2.msra.mxu1 %v569_v48 }
  0x98   :  { %833 = vmatprep.subr.mxu0 %v590_v37  ;;  %854 = vmatprep.subr.mxu1 %v568_v51 }
  0x99   :  { %834 = vmatpush2.msra.mxu0 %v589_v39 }
  0x9a   :  { %835 = vmatprep.subr.mxu0 %v584_v41 }
  0x9b   :  { %836 = vmatpush2.msra.mxu0 %v583_v43 }
  0x9c   :  { %837 = vmatprep.subr.mxu0 %v578_v45 }
  0x9d   :  { %838 = vmatpush2.msra.mxu0 %v577_v47 }
  0x9e   :  { %839 = vmatprep.subr.mxu0 %v572_v49 }
  0x9f   :  { %840 = vmatpush2.msra.mxu0 %v571_v50 }
 0x10f   :  { %v244_v61 = vpop.f32.mrf.mxu0  ;;  %v321_v62 = vpop.f32.mrf.mxu1 }
 0x110   :  { %v245_v63 = vadd.f32 %v244_v61, %v144_v59  ;;  %v322_v16 = vadd.f32 %v321_v62, %v152_v10 }
 0x111   :  { %v246_v1 = vpop.f32.mrf.mxu0  ;;  %v323_v2 = vpop.f32.mrf.mxu1 }
 0x112   :  { %v1148_v3 = vmul.f32 -1.442695, %v245_v63  ;;  %v324_v5 = vadd.f32 %v323_v2, %v156_v60  ;;  %v1150_v21 = vmul.f32 -1.442695, %v322_v16  ;;  %v247_v23 = vadd.f32 %v246_v1, %v148_v17  ;;  %v567_v16 = vld [vmem:[#allocation7 + $0x2f0] sm:$0xff] }
 0x113   :  { %v327_v6 = vpop.f32.mrf.mxu1 }
 0x114   :  { %1224 = vpow2.f32 %v1148_v3  ;;  %v1152_v7 = vmul.f32 -1.442695, %v324_v5  ;;  %v250_v8 = vpop.f32.mrf.mxu0  ;;  %v328_v19 = vadd.f32 %v327_v6, %v152_v10 }
 0x115   :  { %v251_v0 = vadd.f32 %v250_v8, %v144_v59  ;;  %v329_v9 = vpop.f32.mrf.mxu1 }
 0x116   :  { %v330_v11 = vadd.f32 %v329_v9, %v156_v60  ;;  %1226 = vpow2.f32 %v1152_v7  ;;  %v252_v22 = vpop.f32.mrf.mxu0  ;;  %v1151_v25 = vmul.f32 -1.442695, %v328_v19  ;;  %v562_v19 = vld [vmem:[#allocation7 + $0x2c8] sm:$0xff] }
 0x117   :  { %v1149_v13 = vmul.f32 -1.442695, %v251_v0  ;;  %v253_v33 = vadd.f32 %v252_v22, %v148_v17  ;;  %v556_v22 = vld [vmem:[#allocation7 + $0x298] sm:$0xff] }
 0x118   :  { %v1153_v14 = vmul.f32 -1.442695, %v330_v11 }
 0x119   :  { %1228 = vpow2.f32 %v1149_v13 }
 0x11a   :  { %1230 = vpow2.f32 %v1153_v14 }
 0x11b   :  { %1232 = vpow2.f32 %v1150_v21  ;;  %v561_v21 = vld [vmem:[#allocation7 + $0x2c0] sm:$0xff] }
 0x11c   :  { %1234 = vtanh.f32 %v247_v23 }
 0x11d   :  { %1236 = vpow2.f32 %v1151_v25  ;;  %v550_v25 = vld [vmem:[#allocation7 + $0x268] sm:$0xff] }
 0x120   :  { %v398_v26 = vpop.f32.mrf.mxu0 }
 0x121   :  { %v1225_v27 = vpop.eup %1224  ;;  %v399_v28 = vadd.f32 %v398_v26, %v160_v20  ;;  %v549_v26 = vld [vmem:[#allocation7 + $0x260] sm:$0xff] }
 0x122   :  { %v415_v29 = vadd.f32 1.0, %v1225_v27  ;;  %v400_v30 = vpop.f32.mrf.mxu0  ;;  %v544_v27 = vld [vmem:[#allocation7 + $0x238] sm:$0xff] }
 0x123   :  { %v401_v31 = vadd.f32 %v400_v30, %v164_v24  ;;  %v1227_v32 = vpop.eup %1226  ;;  %1238 = vtanh.f32 %v399_v28  ;;  %v543_v28 = vld [vmem:[#allocation7 + $0x230] sm:$0xff]  ;;  %v537_v30 = vld [vmem:[#allocation7 + $0x200] sm:$0xff] }
 0x124   :  { %v404_v34 = vpop.f32.mrf.mxu0  ;;  %v447_v35 = vadd.f32 1.0, %v1227_v32  ;;  %1240 = vrcp.f32 %v415_v29  ;;  %v538_v29 = vld [vmem:[#allocation7 + $0x208] sm:$0xff]  ;;  %v531_v32 = vld [vmem:[#allocation7 + $0x1d0] sm:$0xff] }
 0x125   :  { %v1154_v40 = vmul.f32 -1.442695, %v401_v31  ;;  %v405_v43 = vadd.f32 %v404_v34, %v160_v20  ;;  %v532_v31 = vld [vmem:[#allocation7 + $0x1d8] sm:$0xff]  ;;  %v525_v34 = vld [vmem:[#allocation7 + $0x1a0] sm:$0xff] }
 0x126   :  { %v1229_v36 = vpop.eup %1228  ;;  %v406_v37 = vpop.f32.mrf.mxu0  ;;  %1242 = vrcp.f32 %v447_v35  ;;  %v520_v35 = vld [vmem:[#allocation7 + $0x178] sm:$0xff] }
 0x127   :  { %v1231_v38 = vpop.eup %1230  ;;  %v416_v39 = vadd.f32 1.0, %v1229_v36  ;;  %v407_v41 = vadd.f32 %v406_v37, %v164_v24  ;;  %1244 = vtanh.f32 %v253_v33  ;;  %v555_v24 = vld [vmem:[#allocation7 + $0x290] sm:$0xff]  ;;  %v526_v33 = vld [vmem:[#allocation7 + $0x1a8] sm:$0xff] }
 0x128   :  { %v448_v42 = vadd.f32 1.0, %v1231_v38  ;;  %v1233_v45 = vpop.eup %1232  ;;  %v519_v36 = vld [vmem:[#allocation7 + $0x170] sm:$0xff]  ;;  %v514_v37 = vld [vmem:[#allocation7 + $0x148] sm:$0xff]  ;;  %v513_v38 = vld [vmem:[#allocation7 + $0x140] sm:$0xff] }
 0x129   :  { %1246 = vrcp.f32 %v416_v39  ;;  %v1155_v44 = vmul.f32 -1.442695, %v407_v41  ;;  %v1235_v46 = vpop.eup %1234  ;;  %v429_v50 = vadd.f32 1.0, %v1233_v45  ;;  %v508_v39 = vld [vmem:[#allocation7 + $0x118] sm:$0xff]  ;;  %v502_v41 = vld [vmem:[#allocation7 + $0xe8] sm:$0xff] }
 0x12a   :  { %1248 = vrcp.f32 %v448_v42  ;;  %v1237_v47 = vpop.eup %1236  ;;  %v501_v42 = vld [vmem:[#allocation7 + $0xe0] sm:$0xff]  ;;  %v490_v45 = vld [vmem:[#allocation7 + $0x88] sm:$0xff] }
 0x12b   :  { %1250 = vpow2.f32 %v1154_v40  ;;  %v430_v52 = vadd.f32 1.0, %v1237_v47  ;;  %v507_v40 = vld [vmem:[#allocation7 + $0x110] sm:$0xff]  ;;  %v484_v47 = vld [vmem:[#allocation7 + $0x58] sm:$0xff] }
 0x12c   :  { %1252 = vtanh.f32 %v405_v43  ;;  %v496_v43 = vld [vmem:[#allocation7 + $0xb8] sm:$0xff] }
 0x12d   :  { %1254 = vpow2.f32 %v1155_v44  ;;  %v495_v44 = vld [vmem:[#allocation7 + $0xb0] sm:$0xff] }
 0x12e   :  { %1256 = vrcp.f32 %v429_v50  ;;  %v477_v50 = vld [vmem:[#allocation7 + $0x20] sm:$0xff] }
 0x12f   :  { %1258 = vrcp.f32 %v430_v52  ;;  %v663_v52 = vld [vmem:[#allocation7 + $0x5f0] sm:$0xff] }
 0x130   :  { %v1239_v48 = vpop.eup %1238 }
 0x131   :  { %v1241_v49 = vpop.eup %1240 }
 0x132   :  { %v435_v59 = vmul.f32 %v1241_v49, %v1235_v46  ;;  %v489_v46 = vld [vmem:[#allocation7 + $0x80] sm:$0xff]  ;;  %v478_v49 = vld [vmem:[#allocation7 + $0x28] sm:$0xff] }
 0x133   :  { %v1243_v51 = vpop.eup %1242 }
 0x134   :  { %v1245_v54 = vpop.eup %1244  ;;  %v467_v55 = vmul.f32 %v1243_v51, %v1239_v48  ;;  %v483_v48 = vld [vmem:[#allocation7 + $0x50] sm:$0xff]  ;;  %v664_v51 = vld [vmem:[#allocation7 + $0x5f8] sm:$0xff] }
 0x136   :  { %v1247_v56 = vpop.eup %1246  ;;  %1260 = vtanh.f32 %v467_v55  ;;  %v657_v55 = vld [vmem:[#allocation7 + $0x5c0] sm:$0xff] }
 0x137   :  { %v1249_v60 = vpop.eup %1248  ;;  %1262 = vtanh.f32 %v435_v59  ;;  %v436_v2 = vmul.f32 %v1247_v56, %v1245_v54  ;;  %v658_v54 = vld [vmem:[#allocation7 + $0x5c8] sm:$0xff]  ;;  %v652_v56 = vld [vmem:[#allocation7 + $0x598] sm:$0xff]  ;;  %v651_v59 = vld [vmem:[#allocation7 + $0x590] sm:$0xff] }
 0x138   :  { %v1251_v61 = vpop.eup %1250 }
 0x139   :  { %v1253_v62 = vpop.eup %1252  ;;  %v461_v63 = vadd.f32 1.0, %v1251_v61  ;;  %v645_v61 = vld [vmem:[#allocation7 + $0x560] sm:$0xff] }
 0x13a   :  { %v1255_v1 = vpop.eup %1254  ;;  %v468_v3 = vmul.f32 %v1253_v62, %v1249_v60  ;;  %v646_v60 = vld [vmem:[#allocation7 + $0x568] sm:$0xff]  ;;  %v640_v62 = vld [vmem:[#allocation7 + $0x538] sm:$0xff] }
 0x13b   :  { %1264 = vrcp.f32 %v461_v63  ;;  %v462_v5 = vadd.f32 1.0, %v1255_v1  ;;  %v1257_v6 = vpop.eup %1256  ;;  %v639_v63 = vld [vmem:[#allocation7 + $0x530] sm:$0xff]  ;;  %v634_v1 = vld [vmem:[#allocation7 + $0x508] sm:$0xff] }
 0x13c   :  { %1266 = vtanh.f32 %v468_v3  ;;  %v1259_v7 = vpop.eup %1258  ;;  %v628_v3 = vld [vmem:[#allocation7 + $0x4d8] sm:$0xff] }
 0x13d   :  { %1268 = vrcp.f32 %v462_v5  ;;  %v627_v5 = vld [vmem:[#allocation7 + $0x4d0] sm:$0xff] }
 0x13e   :  { %1270 = vtanh.f32 %v436_v2  ;;  %v633_v2 = vld [vmem:[#allocation7 + $0x500] sm:$0xff] }
 0x143   :  { %v1261_v8 = vpop.eup %1260 }
 0x144   :  { %v1263_v0 = vpop.eup %1262 }
 0x145   :  { %v1569_v14 = vmul.f32 %v1263_v0, %v1257_v6  ;;  %v622_v6 = vld [vmem:[#allocation7 + $0x4a8] sm:$0xff]  ;;  %v615_v0 = vld [vmem:[#allocation7 + $0x470] sm:$0xff] }
 0x148   :  { %v1265_v9 = vpop.eup %1264 }
 0x149   :  { %v1267_v10 = vpop.eup %1266  ;;  %v471_v11 = vmul.f32 %v1265_v9, %v1261_v8  ;;  %v616_v8 = vld [vmem:[#allocation7 + $0x478] sm:$0xff]  ;;  %v610_v9 = vld [vmem:[#allocation7 + $0x448] sm:$0xff] }
 0x14a   :  { %v1269_v13 = vpop.eup %1268 }
 0x14b   :  { %v1271_v17 = vpop.eup %1270  ;;  %764 = vmatprep.mubr.f32.mxu1 %v471_v11  ;;  %841 = vmatprep.mubr.f32.mxu0 %v471_v11  ;;  %v1571_v20 = vmul.f32 %v1269_v13, %v1267_v10  ;;  %v609_v10 = vld [vmem:[#allocation7 + $0x440] sm:$0xff]  ;;  %v603_v13 = vld [vmem:[#allocation7 + $0x410] sm:$0xff] }
 0x14c   :  { %765 = vmatmul.mubr.f32.vlgmr.msra.gmra.mxu1 %v1569_v14  ;;  %842 = vmatmul.mubr.f32.vlgmr.msra.gmra.mxu0 %v1569_v14  ;;  %v1577_v23 = vmul.f32 %v1271_v17, %v1259_v7  ;;  %v621_v7 = vld [vmem:[#allocation7 + $0x4a0] sm:$0xff] }
 0x14d   :  { %855 = vmatpush1.msra.mxu1 %v567_v16  ;;  %770 = vmatprep.mubr.f32.mxu1 %v1571_v20  ;;  %v598_v16 = vld [vmem:[#allocation7 + $0x3e8] sm:$0xff]  ;;  %v597_v17 = vld [vmem:[#allocation7 + $0x3e0] sm:$0xff] }
 0x14e   :  { %856 = vmatprep.subr.mxu1 %v562_v19  ;;  %847 = vmatprep.mubr.f32.mxu0 %v1571_v20  ;;  %v592_v19 = vld [vmem:[#allocation7 + $0x3b8] sm:$0xff] }
 0x14f   :  { %857 = vmatpush1.msra.mxu1 %v561_v21  ;;  %v591_v21 = vld [vmem:[#allocation7 + $0x3b0] sm:$0xff] }
 0x150   :  { %858 = vmatprep.subr.mxu1 %v556_v22  ;;  %771 = vmatmul.mubr.f32.gmra.mxu1 %v1577_v23  ;;  %v586_v22 = vld [vmem:[#allocation7 + $0x388] sm:$0xff] }
 0x151   :  { %848 = vmatmul.mubr.f32.gmra.mxu0 %v1577_v23  ;;  %859 = vmatpush1.msra.mxu1 %v555_v24  ;;  %v585_v24 = vld [vmem:[#allocation7 + $0x380] sm:$0xff] }
 0x152   :  { %860 = vmatprep.subr.mxu1 %v550_v25  ;;  %918 = vmatprep.mubr.f32.mxu1 %v471_v11  ;;  %v604_v11 = vld [vmem:[#allocation7 + $0x418] sm:$0xff] }
 0x153   :  { %861 = vmatpush1.msra.mxu1 %v549_v26  ;;  %v580_v25 = vld [vmem:[#allocation7 + $0x358] sm:$0xff]  ;;  %v579_v26 = vld [vmem:[#allocation7 + $0x350] sm:$0xff] }
 0x154   :  { %862 = vmatprep.subr.mxu1 %v544_v27  ;;  %v574_v27 = vld [vmem:[#allocation7 + $0x328] sm:$0xff] }
 0x155   :  { %863 = vmatpush1.msra.mxu1 %v543_v28  ;;  %v573_v28 = vld [vmem:[#allocation7 + $0x320] sm:$0xff] }
 0x156   :  { %864 = vmatprep.subr.mxu1 %v538_v29  ;;  %v1034_v29 = vld [vmem:[#allocation8 + $0xf8] sm:$0xff] }
 0x157   :  { %865 = vmatpush1.msra.mxu1 %v537_v30  ;;  %1173 = vmatprep.subr.mxu0 %v1034_v29  ;;  %v1018_v30 = vld [vmem:[#allocation8 + $0x78] sm:$0xff] }
 0x158   :  { %866 = vmatprep.subr.mxu1 %v532_v31  ;;  %1174 = vmatpush3.msra.mxu0 %v1018_v30  ;;  %v1033_v31 = vld [vmem:[#allocation8 + $0xf0] sm:$0xff] }
 0x159   :  { %867 = vmatpush1.msra.mxu1 %v531_v32  ;;  %1175 = vmatprep.subr.mxu0 %v1033_v31  ;;  %v1017_v32 = vld [vmem:[#allocation8 + $0x70] sm:$0xff] }
 0x15a   :  { %868 = vmatprep.subr.mxu1 %v526_v33  ;;  %1176 = vmatpush3.msra.mxu0 %v1017_v32  ;;  %v1032_v33 = vld [vmem:[#allocation8 + $0xe8] sm:$0xff] }
 0x15b   :  { %869 = vmatpush1.msra.mxu1 %v525_v34  ;;  %1177 = vmatprep.subr.mxu0 %v1032_v33  ;;  %v1016_v34 = vld [vmem:[#allocation8 + $0x68] sm:$0xff] }
 0x15c   :  { %870 = vmatprep.subr.mxu1 %v520_v35  ;;  %1178 = vmatpush3.msra.mxu0 %v1016_v34  ;;  %v1031_v35 = vld [vmem:[#allocation8 + $0xe0] sm:$0xff] }
 0x15d   :  { %871 = vmatpush1.msra.mxu1 %v519_v36  ;;  %1179 = vmatprep.subr.mxu0 %v1031_v35  ;;  %v1015_v36 = vld [vmem:[#allocation8 + $0x60] sm:$0xff] }
 0x15e   :  { %872 = vmatprep.subr.mxu1 %v514_v37  ;;  %1180 = vmatpush3.msra.mxu0 %v1015_v36  ;;  %v1013_v37 = vld [vmem:[#allocation8 + $0x50] sm:$0xff] }
 0x15f   :  { %873 = vmatpush1.msra.mxu1 %v513_v38  ;;  %v1028_v38 = vld [vmem:[#allocation8 + $0xc8] sm:$0xff] }
 0x160   :  { %874 = vmatprep.subr.mxu1 %v508_v39  ;;  %v1012_v39 = vld [vmem:[#allocation8 + $0x48] sm:$0xff] }
 0x161   :  { %875 = vmatpush1.msra.mxu1 %v507_v40  ;;  %v1027_v40 = vld [vmem:[#allocation8 + $0xc0] sm:$0xff] }
 0x162   :  { %876 = vmatprep.subr.mxu1 %v502_v41  ;;  %v1011_v41 = vld [vmem:[#allocation8 + $0x40] sm:$0xff] }
 0x163   :  { %877 = vmatpush1.msra.mxu1 %v501_v42  ;;  %v1026_v42 = vld [vmem:[#allocation8 + $0xb8] sm:$0xff] }
 0x164   :  { %878 = vmatprep.subr.mxu1 %v496_v43  ;;  %v1010_v43 = vld [vmem:[#allocation8 + $0x38] sm:$0xff] }
 0x165   :  { %879 = vmatpush1.msra.mxu1 %v495_v44  ;;  %v1025_v44 = vld [vmem:[#allocation8 + $0xb0] sm:$0xff] }
 0x166   :  { %880 = vmatprep.subr.mxu1 %v490_v45  ;;  %v1009_v45 = vld [vmem:[#allocation8 + $0x30] sm:$0xff] }
 0x167   :  { %881 = vmatpush1.msra.mxu1 %v489_v46  ;;  %v1024_v46 = vld [vmem:[#allocation8 + $0xa8] sm:$0xff] }
 0x168   :  { %882 = vmatprep.subr.mxu1 %v484_v47  ;;  %v1008_v47 = vld [vmem:[#allocation8 + $0x28] sm:$0xff] }
 0x169   :  { %883 = vmatpush1.msra.mxu1 %v483_v48  ;;  %v1023_v48 = vld [vmem:[#allocation8 + $0xa0] sm:$0xff] }
 0x16a   :  { %884 = vmatprep.subr.mxu1 %v478_v49  ;;  %v1007_v49 = vld [vmem:[#allocation8 + $0x20] sm:$0xff] }
 0x16b   :  { %885 = vmatpush1.msra.mxu1 %v477_v50  ;;  %v1022_v50 = vld [vmem:[#allocation8 + $0x98] sm:$0xff] }
 0x16c   :  { %886 = vmatprep.subr.mxu1 %v664_v51  ;;  %v1006_v51 = vld [vmem:[#allocation8 + $0x18] sm:$0xff] }
 0x16d   :  { %887 = vmatpush2.msra.mxu1 %v663_v52  ;;  %v1021_v52 = vld [vmem:[#allocation8 + $0x90] sm:$0xff] }
 0x16e   :  { %888 = vmatprep.subr.mxu1 %v658_v54  ;;  %v1005_v54 = vld [vmem:[#allocation8 + $0x10] sm:$0xff] }
 0x16f   :  { %889 = vmatpush2.msra.mxu1 %v657_v55  ;;  %v1020_v55 = vld [vmem:[#allocation8 + $0x88] sm:$0xff] }
 0x170   :  { %890 = vmatprep.subr.mxu1 %v652_v56  ;;  %v1004_v56 = vld [vmem:[#allocation8 + $0x8] sm:$0xff] }
 0x171   :  { %891 = vmatpush2.msra.mxu1 %v651_v59  ;;  %v1019_v59 = vld [vmem:[#allocation8 + $0x80] sm:$0xff] }
 0x172   :  { %892 = vmatprep.subr.mxu1 %v646_v60  ;;  %v1003_v60 = vld [vmem:[#allocation8] sm:$0xff] }
 0x173   :  { %893 = vmatpush2.msra.mxu1 %v645_v61  ;;  %v666_v61 = vld [vmem:[#allocation10 + $0x1] ss:$8 sm:$0xf] }
 0x174   :  { %894 = vmatprep.subr.mxu1 %v640_v62  ;;  %v667_v62 = vld [vmem:[#allocation10 + $0x1] ss:$8 sm:$0x30] }
 0x175   :  { %895 = vmatpush2.msra.mxu1 %v639_v63  ;;  %v668_v63 = vor.u32 %v667_v62, %v666_v61 }
 0x176   :  { %896 = vmatprep.subr.mxu1 %v634_v1 }
 0x177   :  { %897 = vmatpush2.msra.mxu1 %v633_v2  ;;  %v689_v35 = vrot.slane %v668_v63, %v159_v15 }
 0x178   :  { %898 = vmatprep.subr.mxu1 %v628_v3  ;;  %v673_v3 = vrot.slane %v668_v63, %v143_v57  ;;  %v681_v57 = vrot.slane %v668_v63, %v151_v4 }
 0x179   :  { %899 = vmatpush2.msra.mxu1 %v627_v5 }
 0x17a   :  { %900 = vmatprep.subr.mxu1 %v622_v6 }
 0x17b   :  { %901 = vmatpush2.msra.mxu1 %v621_v7 }
 0x17c   :  { %902 = vmatprep.subr.mxu1 %v616_v8 }
 0x17d   :  { %903 = vmatpush2.msra.mxu1 %v615_v0  ;;  %v685_v0 = vrot.slane %v668_v63, %v155_v58  ;;  %v677_v58 = vrot.slane %v668_v63, %v147_v12  ;;  %v693_v12 = vrot.slane %v668_v63, %v163_v18 }
 0x17e   :  { %904 = vmatprep.subr.mxu1 %v610_v9 }
 0x17f   :  { %905 = vmatpush2.msra.mxu1 %v609_v10 }
 0x180   :  { %906 = vmatprep.subr.mxu1 %v604_v11 }
 0x181   :  { %907 = vmatpush2.msra.mxu1 %v603_v13 }
 0x182   :  { %908 = vmatprep.subr.mxu1 %v598_v16 }
 0x183   :  { %909 = vmatpush2.msra.mxu1 %v597_v17 }
 0x184   :  { %910 = vmatprep.subr.mxu1 %v592_v19 }
 0x185   :  { %911 = vmatpush2.msra.mxu1 %v591_v21 }
 0x186   :  { %912 = vmatprep.subr.mxu1 %v586_v22 }
 0x187   :  { %913 = vmatpush2.msra.mxu1 %v585_v24 }
 0x188   :  { %914 = vmatprep.subr.mxu1 %v580_v25 }
 0x189   :  { %915 = vmatpush2.msra.mxu1 %v579_v26 }
 0x18a   :  { %916 = vmatprep.subr.mxu1 %v574_v27 }
 0x18b   :  { %917 = vmatpush2.msra.mxu1 %v573_v28 }
 0x18c   :  { %919 = vmatmul.mubr.f32.vlgmr.msra.gmra.mxu1 %v1569_v14  ;;  %v1030_v14 = vld [vmem:[#allocation8 + $0xd8] sm:$0xff] }
 0x18d   :  { %924 = vmatprep.mubr.f32.mxu1 %v1571_v20  ;;  %1181 = vmatprep.subr.mxu0 %v1030_v14  ;;  %v1014_v20 = vld [vmem:[#allocation8 + $0x58] sm:$0xff] }
 0x18e   :  { %1182 = vmatpush3.msra.mxu0 %v1014_v20 }
 0x190   :  { %925 = vmatmul.mubr.f32.gmra.mxu1 %v1577_v23  ;;  %v1029_v23 = vld [vmem:[#allocation8 + $0xd0] sm:$0xff] }
 0x191   :  { %1183 = vmatprep.subr.mxu0 %v1029_v23 }
 0x192   :  { %1184 = vmatpush3.msra.mxu0 %v1013_v37 }
 0x193   :  { %1185 = vmatprep.subr.mxu0 %v1028_v38 }
 0x194   :  { %1186 = vmatpush3.msra.mxu0 %v1012_v39 }
 0x195   :  { %1187 = vmatprep.subr.mxu0 %v1027_v40 }
 0x196   :  { %1188 = vmatpush3.msra.mxu0 %v1011_v41 }
 0x197   :  { %1189 = vmatprep.subr.mxu0 %v1026_v42 }
 0x198   :  { %1190 = vmatpush3.msra.mxu0 %v1010_v43 }
 0x199   :  { %1191 = vmatprep.subr.mxu0 %v1025_v44 }
 0x19a   :  { %1192 = vmatpush3.msra.mxu0 %v1009_v45 }
 0x19b   :  { %1193 = vmatprep.subr.mxu0 %v1024_v46 }
 0x19c   :  { %1194 = vmatpush3.msra.mxu0 %v1008_v47 }
 0x19d   :  { %1195 = vmatprep.subr.mxu0 %v1023_v48 }
 0x19e   :  { %1196 = vmatpush3.msra.mxu0 %v1007_v49 }
 0x19f   :  { %1197 = vmatprep.subr.mxu0 %v1022_v50 }
 0x1a0   :  { %1198 = vmatpush3.msra.mxu0 %v1006_v51 }
 0x1a1   :  { %1199 = vmatprep.subr.mxu0 %v1021_v52 }
 0x1a2   :  { %1200 = vmatpush3.msra.mxu0 %v1005_v54 }
 0x1a3   :  { %1201 = vmatprep.subr.mxu0 %v1020_v55 }
 0x1a4   :  { %1202 = vmatpush3.msra.mxu0 %v1004_v56 }
 0x1a5   :  { %1203 = vmatprep.subr.mxu0 %v1019_v59 }
 0x1a6   :  { %1204 = vmatpush3.msra.mxu0 %v1003_v60 }
 0x20c   :  { %v766_v1 = vpop.f32.mrf.mxu1  ;;  %v843_v2 = vpop.f32.mrf.mxu0 }
 0x20d   :  { %v767_v7 = vadd.f32 %v766_v1, %v673_v3  ;;  %v844_v24 = vadd.f32 %v843_v2, %v681_v57 }
 0x20e   :  { %v768_v5 = vpop.f32.mrf.mxu1  ;;  %v845_v6 = vpop.f32.mrf.mxu0 }
 0x20f   :  { %v1156_v11 = vmul.f32 -1.442695, %v767_v7  ;;  %v846_v13 = vadd.f32 %v845_v6, %v685_v0  ;;  %v1158_v27 = vmul.f32 -1.442695, %v844_v24  ;;  %v769_v30 = vadd.f32 %v768_v5, %v677_v58 }
 0x210   :  { %v772_v8 = vpop.f32.mrf.mxu1 }
 0x211   :  { %v849_v9 = vpop.f32.mrf.mxu0  ;;  %v773_v10 = vadd.f32 %v772_v8, %v673_v3  ;;  %1272 = vpow2.f32 %v1156_v11  ;;  %v1160_v21 = vmul.f32 -1.442695, %v846_v13 }
 0x212   :  { %v850_v26 = vadd.f32 %v849_v9, %v681_v57  ;;  %v774_v31 = vpop.f32.mrf.mxu1 }
 0x213   :  { %v851_v16 = vpop.f32.mrf.mxu0  ;;  %v1157_v17 = vmul.f32 -1.442695, %v773_v10  ;;  %v775_v4 = vadd.f32 %v774_v31, %v677_v58 }
 0x214   :  { %v852_v19 = vadd.f32 %v851_v16, %v685_v0  ;;  %v1159_v33 = vmul.f32 -1.442695, %v850_v26 }
 0x215   :  { %1274 = vpow2.f32 %v1157_v17 }
 0x216   :  { %v1161_v22 = vmul.f32 -1.442695, %v852_v19  ;;  %1276 = vpow2.f32 %v1160_v21 }
 0x218   :  { %1278 = vpow2.f32 %v1161_v22 }
 0x219   :  { %1280 = vpow2.f32 %v1158_v27 }
 0x21e   :  { %v1273_v25 = vpop.eup %1272 }
 0x21f   :  { %v937_v29 = vadd.f32 1.0, %v1273_v25 }
 0x221   :  { %1282 = vrcp.f32 %v937_v29  ;;  %v1035_v29 = vld [vmem:[#allocation10 + $0x2] ss:$0 sm:$0xff] }
 0x222   :  { %v1275_v28 = vpop.eup %1274  ;;  %1284 = vtanh.f32 %v769_v30 }
 0x223   :  { %v1277_v32 = vpop.eup %1276  ;;  %v938_v34 = vadd.f32 1.0, %v1275_v28  ;;  %1286 = vpow2.f32 %v1159_v33 }
 0x224   :  { %v969_v14 = vadd.f32 1.0, %v1277_v32 }
 0x225   :  { %v1279_v36 = vpop.eup %1278  ;;  %1288 = vrcp.f32 %v938_v34 }
 0x226   :  { %1290 = vtanh.f32 %v775_v4  ;;  %v970_v37 = vadd.f32 1.0, %v1279_v36  ;;  %v1281_v18 = vpop.eup %1280 }
 0x227   :  { %1292 = vrcp.f32 %v969_v14  ;;  %v951_v51 = vadd.f32 1.0, %v1281_v18 }
 0x22e   :  { %v1283_v44 = vpop.eup %1282 }
 0x22f   :  { %v1285_v45 = vpop.eup %1284 }
 0x230   :  { %v1287_v46 = vpop.eup %1286  ;;  %v957_v48 = vmul.f32 %v1285_v45, %v1283_v44 }
 0x231   :  { %v952_v60 = vadd.f32 1.0, %v1287_v46 }
 0x232   :  { %v1289_v47 = vpop.eup %1288 }
 0x233   :  { %v1291_v49 = vpop.eup %1290 }
 0x234   :  { %v1293_v50 = vpop.eup %1292  ;;  %v958_v54 = vmul.f32 %v1291_v49, %v1289_v47 }
 0x24c   :  { %v920_v20 = vpop.f32.mrf.mxu1 }
 0x24d   :  { %v921_v23 = vadd.f32 %v920_v20, %v689_v35 }
 0x24e   :  { %v922_v38 = vpop.f32.mrf.mxu1 }
 0x24f   :  { %v923_v39 = vadd.f32 %v922_v38, %v693_v12  ;;  %1294 = vtanh.f32 %v921_v23 }
 0x250   :  { %v926_v40 = vpop.f32.mrf.mxu1  ;;  %1296 = vrcp.f32 %v970_v37 }
 0x251   :  { %v1162_v15 = vmul.f32 -1.442695, %v923_v39  ;;  %v927_v41 = vadd.f32 %v926_v40, %v689_v35 }
 0x252   :  { %v928_v42 = vpop.f32.mrf.mxu1 }
 0x253   :  { %1298 = vpow2.f32 %v1162_v15  ;;  %v929_v43 = vadd.f32 %v928_v42, %v693_v12 }
 0x254   :  { %1300 = vtanh.f32 %v927_v41 }
 0x255   :  { %v1163_v53 = vmul.f32 -1.442695, %v929_v43 }
 0x257   :  { %1302 = vpow2.f32 %v1163_v53 }
 0x258   :  { %1304 = vtanh.f32 %v957_v48 }
 0x259   :  { %1306 = vrcp.f32 %v951_v51 }
 0x25a   :  { %1308 = vtanh.f32 %v958_v54 }
 0x25c   :  { %v1295_v52 = vpop.eup %1294 }
 0x25d   :  { %v989_v55 = vmul.f32 %v1295_v52, %v1293_v50  ;;  %v1297_v56 = vpop.eup %1296 }
 0x25f   :  { %1310 = vtanh.f32 %v989_v55 }
 0x260   :  { %v1299_v59 = vpop.eup %1298 }
 0x261   :  { %v1301_v61 = vpop.eup %1300  ;;  %v983_v62 = vadd.f32 1.0, %v1299_v59 }
 0x262   :  { %v990_v63 = vmul.f32 %v1301_v61, %v1297_v56 }
 0x263   :  { %1312 = vrcp.f32 %v983_v62 }
 0x264   :  { %v1303_v1 = vpop.eup %1302  ;;  %1314 = vrcp.f32 %v952_v60 }
 0x265   :  { %v984_v2 = vadd.f32 1.0, %v1303_v1  ;;  %1316 = vtanh.f32 %v990_v63  ;;  %v1305_v3 = vpop.eup %1304 }
 0x266   :  { %v1307_v5 = vpop.eup %1306 }
 0x267   :  { %1318 = vrcp.f32 %v984_v2  ;;  %v1309_v6 = vpop.eup %1308  ;;  %v961_v7 = vmul.f32 %v1307_v5, %v1305_v3 }
 0x269   :  { %1320 = vtanh.f32 %v961_v7 }
 0x26c   :  { %v1311_v8 = vpop.eup %1310 }
 0x270   :  { %v1313_v0 = vpop.eup %1312 }
 0x271   :  { %v1315_v9 = vpop.eup %1314  ;;  %v993_v10 = vmul.f32 %v1313_v0, %v1311_v8 }
 0x272   :  { %v962_v11 = vmul.f32 %v1315_v9, %v1309_v6  ;;  %v1317_v13 = vpop.eup %1316 }
 0x273   :  { %1322 = vtanh.f32 %v993_v10 }
 0x274   :  { %v1319_v16 = vpop.eup %1318  ;;  %1324 = vtanh.f32 %v962_v11 }
 0x275   :  { %v994_v17 = vmul.f32 %v1319_v16, %v1317_v13 }
 0x276   :  { %v1321_v19 = vpop.eup %1320 }
 0x277   :  { %1326 = vtanh.f32 %v994_v17 }
 0x280   :  { %v1323_v21 = vpop.eup %1322 }
 0x281   :  { %1328 = vtanh.f32 %v1323_v21  ;;  %v1325_v22 = vpop.eup %1324 }
 0x282   :  { %1330 = vtanh.f32 %v1321_v19 }
 0x284   :  { %v1327_v57 = vpop.eup %1326 }
 0x285   :  { %1332 = vtanh.f32 %v1327_v57 }
 0x286   :  { %1334 = vtanh.f32 %v1325_v22 }
 0x28e   :  { %v1329_v24 = vpop.eup %1328 }
 0x28f   :  { %v1331_v25 = vpop.eup %1330  ;;  %1100 = vmatprep.mubr.f32.mxu0 %v1329_v24 }
 0x290   :  { %1101 = vmatmul.mubr.f32.vlgmr.msra.gmra.mxu0 %v1331_v25 }
 0x292   :  { %v1333_v58 = vpop.eup %1332 }
 0x293   :  { %v1335_v26 = vpop.eup %1334  ;;  %1105 = vmatprep.mubr.f32.mxu0 %v1333_v58 }
 0x294   :  { %1106 = vmatmul.mubr.f32.gmra.mxu0 %v1335_v26 }
 0x350   :  { %v1205_v27 = vpop.f32.mrf.mxu0 }
 0x352   :  { %v1206_v28 = vpop.f32.mrf.mxu0 }
 0x353   :  { %v1207_v30 = vadd.f32 %v1206_v28, %v1205_v27 }
 0x354   :  { %v1208_v31 = vpop.f32.mrf.mxu0 }
 0x355   :  { %v1103_v32 = vadd.f32 %v1207_v30, %v1035_v29 }
 0x356   :  { %v1209_v33 = vpop.f32.mrf.mxu0 }
 0x357   :  { %v1210_v34 = vadd.f32 %v1209_v33, %v1208_v31  ;;  %1336 = vtanh.f32 %v1103_v32 }
 0x359   :  { %v1108_v35 = vadd.f32 %v1210_v34, %v1035_v29 }
 0x35b   :  { %1338 = vtanh.f32 %v1108_v35 }
 0x364   :  { %v1337_v4 = vpop.eup %1336 }
 0x368   :  { %v1339_v36 = vpop.eup %1338 }
 0x369   :  { %v1171_v14 = vpack.c.bf16 %v1339_v36, %v1337_v4 }
 0x36b   :  { %1172 = vst [vmem:[#allocation11] sm:$0xff] %v1171_v14  }
 0x36c   :  { %1451 = shalt.err (!%p1448_p1)
}
 0x36d   :  { %s1479_s20 = smov 64   ;;  %s1480_s21 = smov 4  }
 0x36e   :  { %1134 = dma.vmem_to_hbm [thread:$0]  %s1129_s4, 128, %s1604_s5, [#allocation4], %s1479_s20, %s1479_s20, %s1480_s21  }
 0x36f   :  { %1466 = dma.done.wait [#allocation4], 128  }
 0x370   :  { %1467 = vsyncadd [#allocation4], 4294967168 }
 0x371   :  { %1138 = vsyncpa [#allocation3], 1 }
 0x372   :  { %1139 = vsyncpa [#allocation6], 1 }
 0x373   :  { %1140 = vsyncpa [#allocation9], 1 }
 0x374   :  { %1141 = vsyncpa [#allocation4], 1 }

</bundles_post_ra>
